<compile_context>
chip_gen: v7x
topology: tpu7x:2x2x1
jax: 0.10.0
libtpu: 0.0.40
codegen_flags: <defaults>
</compile_context>

<pallas_src>
import functools
import math

import jax
import jax.numpy as jnp
from jax.experimental import pallas as pl
from jax.experimental.pallas import tpu as pltpu


def _round_up(x, m):
    return (x + m - 1) // m * m


# ---------------------------------------------------------------------------
# Pass A: conv(3x3, input pre-padded) + bias -> bf16 intermediate, plus
#         per-channel batch sum / sum-of-squares (train-mode BatchNorm).
# grid = (Cout tiles, N images); statistics accumulate across the image axis.
# ---------------------------------------------------------------------------
def _conv_stats_kernel(x_ref, w_ref, b_ref, conv_ref, stats_ref, col_ref,
                       *, Ho, Wo, Cin, K):
    n = pl.program_id(1)

    @pl.when(n == 0)
    def _init():   # zero this Cout-tile's accumulators at its first image
        stats_ref[...] = jnp.zeros_like(stats_ref)

    # In-kernel im2col: K*K tap copies into a (Ho*Wo, K*K*Cin) VMEM scratch.
    # The dw sublane shift is paid once per tap here, and the conv becomes a
    # single MXU matmul with contraction depth K*K*Cin (not Cin).
    ximg = x_ref[0]                                   # (Hp, Wp, Cin) bf16
    for dh in range(K):
        for dw in range(K):
            k0 = (dh * K + dw) * Cin
            win = ximg[dh:dh + Ho, dw:dw + Wo, :]     # (Ho, Wo, Cin)
            col_ref[:, k0:k0 + Cin] = win.reshape(Ho * Wo, Cin)

    acc = jnp.dot(col_ref[...], w_ref[...],
                  preferred_element_type=jnp.float32)          # (Ho*Wo, Ct)
    acc = acc + b_ref[...]                                     # + conv bias

    conv_bf = acc.astype(jnp.bfloat16)                # bf16 intermediate
    conv_ref[0] = conv_bf.reshape(Ho, Wo, conv_bf.shape[-1])

    # Statistics are taken from the same bf16-rounded values that pass B
    # normalizes, so the two passes stay mutually consistent.
    # TODO(synk): E[x^2]-mean^2 in f32 loses precision for very large
    # N*Ho*Wo; a shifted / Welford-style combine would be more robust.
    cf = conv_bf.astype(jnp.float32)
    stats_ref[0:1, :] = stats_ref[0:1, :] + jnp.sum(cf, axis=0, keepdims=True)
    stats_ref[1:2, :] = stats_ref[1:2, :] + jnp.sum(cf * cf, axis=0,
                                                    keepdims=True)


# ---------------------------------------------------------------------------
# Pass B: y = relu(conv * scale + shift) followed by 2x2 max-pool.
# grid = (N images, Cout tiles); fully parallel (megacore-friendly).
# ---------------------------------------------------------------------------
def _bn_relu_pool_kernel(conv_ref, ss_ref, o_ref, *, Ho, Wo):
    y = conv_ref[0].astype(jnp.float32)               # (Ho, Wo, Ct)
    scale = ss_ref[0:1, :]                            # (1, Ct)
    shift = ss_ref[1:2, :]
    y = jnp.maximum(y * scale + shift, 0.0)           # folded BN + ReLU

    # 2x2 max-pool; Cout stays the minor (lane) dim throughout.
    # TODO(synk): the W-direction pair-max reduces across the sublane-split
    # axis (relayout); a stride-2-view / pltpu.roll formulation would move it
    # to the XLU, but this reshape form is the known-good lowering.
    Ct = y.shape[-1]
    y = y.reshape(Ho // 2, 2, Wo, Ct).max(axis=1)
    y = y.reshape(Ho // 2, Wo // 2, 2, Ct).max(axis=2)
    o_ref[0] = y.astype(o_ref.dtype)


def conv_block_forward(x_nchw, w_oihw, bias, gamma, beta, *, padding=1,
                       eps=1e-5):
    """Forward pass of ConvBlock (pool=True). Input NCHW, output NCHW."""
    N, Cin, H, W = x_nchw.shape
    Cout = w_oihw.shape[0]
    K = 3
    Ho = H + 2 * padding - K + 1
    Wo = W + 2 * padding - K + 1
    # TODO(synk): MaxPool2d(2) on odd Ho/Wo drops the last row/col; only the
    # even case is implemented here.  Conv is fixed to K=3, stride=1.
    assert Ho % 2 == 0 and Wo % 2 == 0
    Hp, Wp = H + 2 * padding, W + 2 * padding

    # Pad Cout to a lane-dense multiple of 128; padded channels are zero
    # end-to-end and sliced off at the end.
    Cp = _round_up(Cout, 128)
    CTILE = 256 if Cp % 256 == 0 else 128
    n_ct = Cp // CTILE
    KKC = K * K * Cin

    # ---- glue (cheap): NCHW -> NHWC, zero-pad spatially, cast to bf16 ------
    x = jnp.transpose(x_nchw, (0, 2, 3, 1)).astype(jnp.float32)
    xp = jnp.pad(x, ((0, 0), (padding, padding), (padding, padding), (0, 0)))
    xp = xp.astype(jnp.bfloat16)

    # weight OIHW -> (dh, dw, cin, cout) -> (K*K*Cin, Cp), zero-padded, bf16.
    w2d = jnp.transpose(w_oihw, (2, 3, 1, 0)).reshape(KKC, Cout)
    w2d = jnp.pad(w2d, ((0, 0), (0, Cp - Cout))).astype(jnp.bfloat16)
    bias_p = jnp.pad(bias.astype(jnp.float32), (0, Cp - Cout)).reshape(1, Cp)

    # ---------------- pass A: conv + bias + batch statistics ----------------
    kern_a = functools.partial(_conv_stats_kernel, Ho=Ho, Wo=Wo, Cin=Cin, K=K)

    in_blk = Hp * Wp * Cin * 2                       # bf16 padded image block
    conv_blk = Ho * Wo * CTILE * 2                   # bf16 conv block
    col_blk = Ho * Wo * KKC * 2                      # im2col scratch
    acc_tmp = Ho * Wo * CTILE * 4 * 2                # f32 acc temporaries
    vmem_a = (2 * (in_blk + conv_blk) + 2 * KKC * CTILE * 2 + col_blk
              + acc_tmp + (4 << 20))
    vmem_a = int(min(max(vmem_a, 16 << 20), 40 << 20))   # fits v7x 64 MiB VMEM

    flops_a = 2 * N * Ho * Wo * KKC * Cp + 3 * N * Ho * Wo * Cp
    bytes_a = (n_ct * xp.size * 2 + w2d.size * 2 + bias_p.size * 4
               + N * Ho * Wo * Cp * 2 + 2 * Cp * 4)

    conv_bf, stats = pl.pallas_call(
        kern_a,
        out_shape=(jax.ShapeDtypeStruct((N, Ho, Wo, Cp), jnp.bfloat16),
                   jax.ShapeDtypeStruct((2, Cp), jnp.float32)),
        grid_spec=pltpu.PrefetchScalarGridSpec(
            num_scalar_prefetch=0,
            grid=(n_ct, N),                          # (Cout tile, image)
            in_specs=[
                pl.BlockSpec((1, Hp, Wp, Cin), lambda c, n: (n, 0, 0, 0)),
                pl.BlockSpec((KKC, CTILE), lambda c, n: (0, c)),
                pl.BlockSpec((1, CTILE), lambda c, n: (0, c)),
            ],
            out_specs=[
                pl.BlockSpec((1, Ho, Wo, CTILE), lambda c, n: (n, 0, 0, c)),
                pl.BlockSpec((2, CTILE), lambda c, n: (0, c)),   # resident acc
            ],
            scratch_shapes=[pltpu.VMEM((Ho * Wo, KKC), jnp.bfloat16)],
        ),
        compiler_params=pltpu.CompilerParams(
            # Cout tiles are independent (per-channel stats) -> "parallel"
            # feeds both v7x TensorCores; the image axis carries the stats
            # accumulator -> "arbitrary".
            dimension_semantics=("parallel", "arbitrary"),
            vmem_limit_bytes=vmem_a,
        ),
        cost_estimate=pl.CostEstimate(flops=flops_a, transcendentals=0,
                                      bytes_accessed=bytes_a),
    )(xp, w2d, bias_p)

    # ---- fold train-mode BN statistics into per-channel scale / shift ------
    # (Cout,)-sized math: trivial XLA op between the two pallas_calls.
    count = float(N * Ho * Wo)
    mean = stats[0] / count
    var = jnp.maximum(stats[1] / count - mean * mean, 0.0)
    inv = jax.lax.rsqrt(var + eps)
    gamma_p = jnp.pad(gamma.astype(jnp.float32), (0, Cp - Cout))
    beta_p = jnp.pad(beta.astype(jnp.float32), (0, Cp - Cout))
    scale = gamma_p * inv
    shift = beta_p - mean * scale
    ss = jnp.stack([scale, shift], axis=0)            # (2, Cp) f32

    # ---------------- pass B: BN affine + ReLU + 2x2 max-pool ---------------
    kern_b = functools.partial(_bn_relu_pool_kernel, Ho=Ho, Wo=Wo)

    out_blk = (Ho // 2) * (Wo // 2) * CTILE * 4
    vmem_b = 2 * (conv_blk + out_blk) + Ho * Wo * CTILE * 4 * 2 + (4 << 20)
    vmem_b = int(min(max(vmem_b, 16 << 20), 40 << 20))

    out_elems = N * (Ho // 2) * (Wo // 2) * Cp
    flops_b = 4 * N * Ho * Wo * Cp
    bytes_b = N * Ho * Wo * Cp * 2 + ss.size * 4 + out_elems * 4

    # TODO(synk): on v5e, emitting the pooled output as bf16 would halve the
    # writeback; kept f32 here to match the module's output dtype.
    out = pl.pallas_call(
        kern_b,
        out_shape=jax.ShapeDtypeStruct((N, Ho // 2, Wo // 2, Cp), jnp.float32),
        grid_spec=pltpu.PrefetchScalarGridSpec(
            num_scalar_prefetch=0,
            grid=(N, n_ct),                          # fully independent tiles
            in_specs=[
                pl.BlockSpec((1, Ho, Wo, CTILE), lambda n, c: (n, 0, 0, c)),
                pl.BlockSpec((2, CTILE), lambda n, c: (0, c)),
            ],
            out_specs=pl.BlockSpec((1, Ho // 2, Wo // 2, CTILE),
                                   lambda n, c: (n, 0, 0, c)),
        ),
        compiler_params=pltpu.CompilerParams(
            dimension_semantics=("parallel", "parallel"),
            vmem_limit_bytes=vmem_b,
        ),
        cost_estimate=pl.CostEstimate(flops=flops_b, transcendentals=0,
                                      bytes_accessed=bytes_b),
    )(conv_bf, ss)

    out = out[..., :Cout]                             # drop lane padding
    return jnp.transpose(out, (0, 3, 1, 2))           # NHWC-pooled -> NCHW


def reference_forward(x, w, b, gamma, beta, eps=1e-5):
    """Pure-JAX reference mirroring the PyTorch module (train-mode BN).

    Uses bf16-rounded conv inputs with f32 accumulation and a bf16-rounded
    conv intermediate, matching the kernel's MXU / bf16 path, so the
    comparison stays tight."""
    xb = x.astype(jnp.bfloat16).astype(jnp.float32)
    wb = w.astype(jnp.bfloat16).astype(jnp.float32)
    conv = jax.lax.conv_general_dilated(
        xb, wb, window_strides=(1, 1), padding=((1, 1), (1, 1)),
        dimension_numbers=("NCHW", "OIHW", "NCHW"),
        preferred_element_type=jnp.float32)
    conv = conv + b[None, :, None, None]
    conv = conv.astype(jnp.bfloat16).astype(jnp.float32)   # bf16 intermediate
    mean = conv.mean(axis=(0, 2, 3), keepdims=True)
    var = ((conv - mean) ** 2).mean(axis=(0, 2, 3), keepdims=True)  # biased
    y = (conv - mean) / jnp.sqrt(var + eps)
    y = y * gamma[None, :, None, None] + beta[None, :, None, None]
    y = jnp.maximum(y, 0.0)
    Nn, C, Hh, Ww = y.shape
    return y.reshape(Nn, C, Hh // 2, 2, Ww // 2, 2).max(axis=(3, 5))


if __name__ == "__main__":
    indim, outdim = 4, 8
    N, H, W = 2, 16, 16

    key = jax.random.PRNGKey(0)
    kx, kw, kb = jax.random.split(key, 3)

    x = jax.random.normal(kx, (N, indim, H, W), dtype=jnp.float32)

    # init_layer: conv weight ~ N(0, sqrt(2 / (K*K*outdim)))
    std = math.sqrt(2.0 / float(3 * 3 * outdim))
    w = std * jax.random.normal(kw, (outdim, indim, 3, 3), dtype=jnp.float32)
    # conv bias: PyTorch default uniform(-1/sqrt(fan_in), 1/sqrt(fan_in))
    bound = 1.0 / math.sqrt(indim * 3 * 3)
    b = jax.random.uniform(kb, (outdim,), minval=-bound, maxval=bound,
                           dtype=jnp.float32)
    # init_layer: BN weight=1, bias=0
    gamma = jnp.ones((outdim,), dtype=jnp.float32)
    beta = jnp.zeros((outdim,), dtype=jnp.float32)

    out = conv_block_forward(x, w, b, gamma, beta)
    out = jax.block_until_ready(out)

    ref = reference_forward(x, w, b, gamma, beta)
    assert out.shape == (N, outdim, H // 2, W // 2), out.shape
    # Tolerance covers MXU / reduction-order differences; structural errors
    # would show up as O(1) deviations.
    max_err = float(jnp.max(jnp.abs(out - ref)))
    assert jnp.allclose(out, ref, rtol=1e-2, atol=1e-2), max_err

    print("KERNEL_OK")
</pallas_src>

<mosaic_0001>
module attributes {stable_mosaic.version = 11 : i64} {
  func.func @_conv_stats_kernel(%arg0: i32, %arg1: i32, %arg2: memref<1x18x18x4xbf16, #tpu.memory_space<vmem>>, %arg3: memref<36x128xbf16, #tpu.memory_space<vmem>>, %arg4: memref<1x128xf32, #tpu.memory_space<vmem>>, %arg5: memref<1x16x16x128xbf16, #tpu.memory_space<vmem>>, %arg6: memref<2x128xf32, #tpu.memory_space<vmem>>, %arg7: memref<256x36xbf16, #tpu.memory_space<vmem>>) attributes {dimension_semantics = [#tpu.dimension_semantics<parallel>, #tpu.dimension_semantics<arbitrary>], iteration_bounds = array<i64: 1, 2>, scalar_prefetch = 0 : i64, scratch_operands = 1 : i64, tpu.core_type = #tpu.core_type<tc>, window_params = [{transform_indices = @transform_0, window_bounds = array<i64: 1, 18, 18, 4>}, {transform_indices = @transform_1, window_bounds = array<i64: 36, 128>}, {transform_indices = @transform_2, window_bounds = array<i64: 1, 128>}, {transform_indices = @transform_3, window_bounds = array<i64: 1, 16, 16, 128>}, {transform_indices = @transform_4, window_bounds = array<i64: 2, 128>}]} {
    %c0_i32 = arith.constant 0 : i32
    %0 = arith.cmpi eq, %arg1, %c0_i32 : i32
    %1 = arith.extui %0 : i1 to i32
    %c0_i32_0 = arith.constant 0 : i32
    %2 = arith.cmpi ne, %1, %c0_i32_0 : i32
    scf.if %2 {
      %cst_33 = arith.constant 0.000000e+00 : f32
      %55 = vector.broadcast %cst_33 : f32 to vector<2x128xf32>
      %c0_34 = arith.constant 0 : index
      %c0_35 = arith.constant 0 : index
      %56 = vector.load %arg6[%c0_34, %c0_35] : memref<2x128xf32, #tpu.memory_space<vmem>>, vector<2x128xf32>
      tpu.vector_store %arg6[%c0_34, %c0_35], %55 {strides = array<i32>} : memref<2x128xf32, #tpu.memory_space<vmem>>, vector<2x128xf32>,
    } else {
    }
    %c0 = arith.constant 0 : index
    %c0_1 = arith.constant 0 : index
    %c0_2 = arith.constant 0 : index
    %c0_3 = arith.constant 0 : index
    %3 = vector.load %arg2[%c0, %c0_1, %c0_2, %c0_3] : memref<1x18x18x4xbf16, #tpu.memory_space<vmem>>, vector<1x18x18x4xbf16>
    %4 = vector.shape_cast %3 : vector<1x18x18x4xbf16> to vector<18x18x4xbf16>
    %5 = vector.extract_strided_slice %4 {offsets = [0, 0, 0], sizes = [16, 16, 4], strides = [1, 1, 1]} : vector<18x18x4xbf16> to vector<16x16x4xbf16>
    %6 = vector.shape_cast %5 : vector<16x16x4xbf16> to vector<256x4xbf16>
    %c0_4 = arith.constant 0 : index
    %c0_5 = arith.constant 0 : index
    %7 = vector.load %arg7[%c0_4, %c0_5] : memref<256x36xbf16, #tpu.memory_space<vmem>>, vector<256x4xbf16>
    tpu.vector_store %arg7[%c0_4, %c0_5], %6 {strides = array<i32>} : memref<256x36xbf16, #tpu.memory_space<vmem>>, vector<256x4xbf16>,
    %8 = vector.extract_strided_slice %4 {offsets = [0, 1, 0], sizes = [16, 16, 4], strides = [1, 1, 1]} : vector<18x18x4xbf16> to vector<16x16x4xbf16>
    %9 = vector.shape_cast %8 : vector<16x16x4xbf16> to vector<256x4xbf16>
    %c0_6 = arith.constant 0 : index
    %c4 = arith.constant 4 : index
    %10 = vector.load %arg7[%c0_6, %c4] : memref<256x36xbf16, #tpu.memory_space<vmem>>, vector<256x4xbf16>
    tpu.vector_store %arg7[%c0_6, %c4], %9 {strides = array<i32>} : memref<256x36xbf16, #tpu.memory_space<vmem>>, vector<256x4xbf16>,
    %11 = vector.extract_strided_slice %4 {offsets = [0, 2, 0], sizes = [16, 16, 4], strides = [1, 1, 1]} : vector<18x18x4xbf16> to vector<16x16x4xbf16>
    %12 = vector.shape_cast %11 : vector<16x16x4xbf16> to vector<256x4xbf16>
    %c0_7 = arith.constant 0 : index
    %c8 = arith.constant 8 : index
    %13 = vector.load %arg7[%c0_7, %c8] : memref<256x36xbf16, #tpu.memory_space<vmem>>, vector<256x4xbf16>
    tpu.vector_store %arg7[%c0_7, %c8], %12 {strides = array<i32>} : memref<256x36xbf16, #tpu.memory_space<vmem>>, vector<256x4xbf16>,
    %14 = vector.extract_strided_slice %4 {offsets = [1, 0, 0], sizes = [16, 16, 4], strides = [1, 1, 1]} : vector<18x18x4xbf16> to vector<16x16x4xbf16>
    %15 = vector.shape_cast %14 : vector<16x16x4xbf16> to vector<256x4xbf16>
    %c0_8 = arith.constant 0 : index
    %c12 = arith.constant 12 : index
    %16 = vector.load %arg7[%c0_8, %c12] : memref<256x36xbf16, #tpu.memory_space<vmem>>, vector<256x4xbf16>
    tpu.vector_store %arg7[%c0_8, %c12], %15 {strides = array<i32>} : memref<256x36xbf16, #tpu.memory_space<vmem>>, vector<256x4xbf16>,
    %17 = vector.extract_strided_slice %4 {offsets = [1, 1, 0], sizes = [16, 16, 4], strides = [1, 1, 1]} : vector<18x18x4xbf16> to vector<16x16x4xbf16>
    %18 = vector.shape_cast %17 : vector<16x16x4xbf16> to vector<256x4xbf16>
    %c0_9 = arith.constant 0 : index
    %c16 = arith.constant 16 : index
    %19 = vector.load %arg7[%c0_9, %c16] : memref<256x36xbf16, #tpu.memory_space<vmem>>, vector<256x4xbf16>
    tpu.vector_store %arg7[%c0_9, %c16], %18 {strides = array<i32>} : memref<256x36xbf16, #tpu.memory_space<vmem>>, vector<256x4xbf16>,
    %20 = vector.extract_strided_slice %4 {offsets = [1, 2, 0], sizes = [16, 16, 4], strides = [1, 1, 1]} : vector<18x18x4xbf16> to vector<16x16x4xbf16>
    %21 = vector.shape_cast %20 : vector<16x16x4xbf16> to vector<256x4xbf16>
    %c0_10 = arith.constant 0 : index
    %c20 = arith.constant 20 : index
    %22 = vector.load %arg7[%c0_10, %c20] : memref<256x36xbf16, #tpu.memory_space<vmem>>, vector<256x4xbf16>
    tpu.vector_store %arg7[%c0_10, %c20], %21 {strides = array<i32>} : memref<256x36xbf16, #tpu.memory_space<vmem>>, vector<256x4xbf16>,
    %23 = vector.extract_strided_slice %4 {offsets = [2, 0, 0], sizes = [16, 16, 4], strides = [1, 1, 1]} : vector<18x18x4xbf16> to vector<16x16x4xbf16>
    %24 = vector.shape_cast %23 : vector<16x16x4xbf16> to vector<256x4xbf16>
    %c0_11 = arith.constant 0 : index
    %c24 = arith.constant 24 : index
    %25 = vector.load %arg7[%c0_11, %c24] : memref<256x36xbf16, #tpu.memory_space<vmem>>, vector<256x4xbf16>
    tpu.vector_store %arg7[%c0_11, %c24], %24 {strides = array<i32>} : memref<256x36xbf16, #tpu.memory_space<vmem>>, vector<256x4xbf16>,
    %26 = vector.extract_strided_slice %4 {offsets = [2, 1, 0], sizes = [16, 16, 4], strides = [1, 1, 1]} : vector<18x18x4xbf16> to vector<16x16x4xbf16>
    %27 = vector.shape_cast %26 : vector<16x16x4xbf16> to vector<256x4xbf16>
    %c0_12 = arith.constant 0 : index
    %c28 = arith.constant 28 : index
    %28 = vector.load %arg7[%c0_12, %c28] : memref<256x36xbf16, #tpu.memory_space<vmem>>, vector<256x4xbf16>
    tpu.vector_store %arg7[%c0_12, %c28], %27 {strides = array<i32>} : memref<256x36xbf16, #tpu.memory_space<vmem>>, vector<256x4xbf16>,
    %29 = vector.extract_strided_slice %4 {offsets = [2, 2, 0], sizes = [16, 16, 4], strides = [1, 1, 1]} : vector<18x18x4xbf16> to vector<16x16x4xbf16>
    %30 = vector.shape_cast %29 : vector<16x16x4xbf16> to vector<256x4xbf16>
    %c0_13 = arith.constant 0 : index
    %c32 = arith.constant 32 : index
    %31 = vector.load %arg7[%c0_13, %c32] : memref<256x36xbf16, #tpu.memory_space<vmem>>, vector<256x4xbf16>
    tpu.vector_store %arg7[%c0_13, %c32], %30 {strides = array<i32>} : memref<256x36xbf16, #tpu.memory_space<vmem>>, vector<256x4xbf16>,
    %c0_14 = arith.constant 0 : index
    %c0_15 = arith.constant 0 : index
    %32 = vector.load %arg7[%c0_14, %c0_15] : memref<256x36xbf16, #tpu.memory_space<vmem>>, vector<256x36xbf16>
    %c0_16 = arith.constant 0 : index
    %c0_17 = arith.constant 0 : index
    %33 = vector.load %arg3[%c0_16, %c0_17] : memref<36x128xbf16, #tpu.memory_space<vmem>>, vector<36x128xbf16>
    %cst = arith.constant dense<0.000000e+00> : vector<256x128xf32>
    %34 = tpu.matmul %32, %33, %cst {dimension_numbers = #tpu.dot_dimension_numbers<[1], [0], [0], [1], [0, 0, 1, 1], [], []>} : vector<256x36xbf16>, vector<36x128xbf16>, vector<256x128xf32> -> vector<256x128xf32>
    %c0_18 = arith.constant 0 : index
    %c0_19 = arith.constant 0 : index
    %35 = vector.load %arg4[%c0_18, %c0_19] : memref<1x128xf32, #tpu.memory_space<vmem>>, vector<1x128xf32>
    %36 = vector.broadcast %35 : vector<1x128xf32> to vector<256x128xf32>
    %37 = arith.addf %34, %36 : vector<256x128xf32>
    %38 = arith.truncf %37 : vector<256x128xf32> to vector<256x128xbf16>
    %39 = vector.shape_cast %38 : vector<256x128xbf16> to vector<16x16x128xbf16>
    %c0_20 = arith.constant 0 : index
    %c0_21 = arith.constant 0 : index
    %c0_22 = arith.constant 0 : index
    %c0_23 = arith.constant 0 : index
    %40 = vector.load %arg5[%c0_20, %c0_21, %c0_22, %c0_23] : memref<1x16x16x128xbf16, #tpu.memory_space<vmem>>, vector<1x16x16x128xbf16>
    %41 = vector.shape_cast %40 : vector<1x16x16x128xbf16> to vector<16x16x128xbf16>
    %42 = vector.shape_cast %39 : vector<16x16x128xbf16> to vector<1x16x16x128xbf16>
    tpu.vector_store %arg5[%c0_20, %c0_21, %c0_22, %c0_23], %42 {strides = array<i32>} : memref<1x16x16x128xbf16, #tpu.memory_space<vmem>>, vector<1x16x16x128xbf16>,
    %43 = arith.extf %38 : vector<256x128xbf16> to vector<256x128xf32>
    %c0_24 = arith.constant 0 : index
    %c0_25 = arith.constant 0 : index
    %44 = vector.load %arg6[%c0_24, %c0_25] : memref<2x128xf32, #tpu.memory_space<vmem>>, vector<1x128xf32>
    %cst_26 = arith.constant dense<0.000000e+00> : vector<128xf32>
    %45 = vector.multi_reduction <add>, %43, %cst_26 [0] : vector<256x128xf32> to vector<128xf32>
    %46 = vector.shape_cast %45 : vector<128xf32> to vector<1x128xf32>
    %47 = arith.addf %44, %46 : vector<1x128xf32>
    %c0_27 = arith.constant 0 : index
    %c0_28 = arith.constant 0 : index
    %48 = vector.load %arg6[%c0_27, %c0_28] : memref<2x128xf32, #tpu.memory_space<vmem>>, vector<1x128xf32>
    tpu.vector_store %arg6[%c0_27, %c0_28], %47 {strides = array<i32>} : memref<2x128xf32, #tpu.memory_space<vmem>>, vector<1x128xf32>,
    %c1 = arith.constant 1 : index
    %c0_29 = arith.constant 0 : index
    %49 = vector.load %arg6[%c1, %c0_29] : memref<2x128xf32, #tpu.memory_space<vmem>>, vector<1x128xf32>
    %50 = arith.mulf %43, %43 : vector<256x128xf32>
    %cst_30 = arith.constant dense<0.000000e+00> : vector<128xf32>
    %51 = vector.multi_reduction <add>, %50, %cst_30 [0] : vector<256x128xf32> to vector<128xf32>
    %52 = vector.shape_cast %51 : vector<128xf32> to vector<1x128xf32>
    %53 = arith.addf %49, %52 : vector<1x128xf32>
    %c1_31 = arith.constant 1 : index
    %c0_32 = arith.constant 0 : index
    %54 = vector.load %arg6[%c1_31, %c0_32] : memref<2x128xf32, #tpu.memory_space<vmem>>, vector<1x128xf32>
    tpu.vector_store %arg6[%c1_31, %c0_32], %53 {strides = array<i32>} : memref<2x128xf32, #tpu.memory_space<vmem>>, vector<1x128xf32>,
    return
  }
  func.func @transform_0(%arg0: i32, %arg1: i32) -> (i32, i32, i32, i32) {
    %c0_i32 = arith.constant 0 : i32
    %c0_i32_0 = arith.constant 0 : i32
    %c0_i32_1 = arith.constant 0 : i32
    %c0_i32_2 = arith.constant 0 : i32
    return %arg1, %c0_i32, %c0_i32_0, %c0_i32_1 : i32, i32, i32, i32
  }
  func.func @transform_1(%arg0: i32, %arg1: i32) -> (i32, i32) {
    %c0_i32 = arith.constant 0 : i32
    %c0_i32_0 = arith.constant 0 : i32
    return %c0_i32, %arg0 : i32, i32
  }
  func.func @transform_2(%arg0: i32, %arg1: i32) -> (i32, i32) {
    %c0_i32 = arith.constant 0 : i32
    %c0_i32_0 = arith.constant 0 : i32
    return %c0_i32, %arg0 : i32, i32
  }
  func.func @transform_3(%arg0: i32, %arg1: i32) -> (i32, i32, i32, i32) {
    %c0_i32 = arith.constant 0 : i32
    %c0_i32_0 = arith.constant 0 : i32
    %c0_i32_1 = arith.constant 0 : i32
    return %arg1, %c0_i32, %c0_i32_0, %arg0 : i32, i32, i32, i32
  }
  func.func @transform_4(%arg0: i32, %arg1: i32) -> (i32, i32) {
    %c0_i32 = arith.constant 0 : i32
    %c0_i32_0 = arith.constant 0 : i32
    return %c0_i32, %arg0 : i32, i32
  }
}

</mosaic_0001>

<bundles_post_ra>
// kernel: tpu_custom_call.1
= control target key start
LH: loop header
LB: loop body
LE: loop exit
PB: predicated region body
PF: predicated region fallthrough
CT: control target
= control target key end

     0   :  { %10 = vsyncpa [#allocation4], 0  ;;  %s4025_s0 = inlined_call_operand.vmem [shape: bf16[2,18,18,4], index: 0, kind: input, shape index: {}]   ;;  %s4026_s1 = inlined_call_operand.vmem [shape: bf16[36,128], index: 1, kind: input, shape index: {}]   ;;  %s4027_s2 = inlined_call_operand.vmem [shape: f32[1,128], index: 2, kind: input, shape index: {}]   ;;  %s4028_s3 = inlined_call_operand.hbm [shape: bf16[2,16,16,128], index: 3, kind: output, shape index: {0}]   ;;  %s4029_s4 = inlined_call_operand.hbm [shape: f32[2,128], index: 4, kind: output, shape index: {1}]  }
   0x1   :  { %12 = vsyncpa [#allocation4 + $0x1], 0 }
   0x2   :  { %13 = vsyncpa [#allocation6], 0  ;;  %s2913_s15 = smov 0   ;;  %s2915_s16 = smov 0  }
   0x3   :  { %s2917_s17 = smov 0   ;;  %s2919_s18 = smov 0  }
   0x4   :  { %s2921_s19 = smov 0   ;;  %s2923_s20 = smov 0  }
   0x5 LB: > { %s2339_s21 = sadd.s32 4294967295, %s2874_s20   ;;  %s2340_s22 = sadd.s32 4294967294, %s2874_s20   ;;  %s2874_s20 = sphi %s2923_s20, %s19_s20   ;;  %s2870_s19 = sphi %s2921_s19, %s4041_s19   ;;  %s2866_s18 = sphi %s2919_s18, %s4040_s18   ;;  %s2862_s17 = sphi %s2917_s17, %s4039_s17   ;;  %s2858_s16 = sphi %s2915_s16, %s4038_s16   ;;  %s2854_s15 = sphi %s2913_s15, %s4037_s15  }
   0x6   : > { %s28_s23 = sadd.s32 1, %s2870_s19  ;;  %s118_s24 = sadd.s32 1, %s2862_s17 }
   0x7   : > { %p29_p0 = scmp.ge.s32.totalorder %s28_s23, 2  ;;  %p128_p1 = scmp.ne.s32.totalorder %s2862_s17, %s2858_s16 }
   0x8   : > { %p2949_p2 = scmp.eq.s32.totalorder %s2339_s21, 1  ;;  %p134_p3 = scmp.ne.s32.totalorder %s2858_s16, %s2854_s15 }
   0x9   : > { %s4043_s23 = smov (%p29_p0, %s28_s23), 0  ;;  %p135_p5 = scmp.eq.s32.totalorder %s2340_s22, 1 }
   0xa   : > { %p2959_p4 = por %p2949_p2, %p128_p1  ;;  %s113_s27 = ssub.s32 %s2870_s19, %s4043_s23 }
   0xb   : > { %p2345_p6 = scmp.ge.s32.totalorder %s2874_s20, 1  ;;  %p116_p7 = scmp.eq.s32.totalorder %s113_s27, 0 }
   0xc   : > { %p2966_p8 = por %p135_p5, %p134_p3  ;;  %p200_p9 = scmp.lt.s32.totalorder %s2874_s20, 3 }
   0xd   : > { %s2972_s29 = scalar_select %p116_p7, %s2862_s17, %s118_s24  }
   0xe   : > { %p201_p10 = pnand %p2345_p6, %p200_p9 }
   0xf   : > { %s228_s30 = sand.u32 (!%p201_p10), 1, %s2858_s16   ;;  %p233_p11 = scmp.lt.s32.totalorder (!%p201_p10), %s2866_s18, 1 }
  0x10   : > { %204 = sbr.rel (%p201_p10) target bundleno = 691 (0x2b3), region = 32  ;;  %s2346_s5 = sshll.u32 (!%p201_p10), %s228_s30, 7 }
  0x11   : > { %s2984_s11 = scalar_lea.vmem (!%p201_p10), [#allocation3], %s2346_s5  ;;  %p2348_p12 = scmp.ne.s32.totalorder (!%p201_p10), %s2866_s18, 0 }
  0x17   : > { %s234_s6 = scalar_select %p233_p11, %s2866_s18, 1 }
  0x18   : > { %249 = sbr.rel (%p2348_p12) target bundleno = 31 (0x1f), region = 36  ;;  %v2876_v0 = vmov (!%p2348_p12), 0.0  }
  0x19   : > { %s2673_s7 = smul.u32 216, %s234_s6  ;;  %250 = vst [vmem:[#allocation5] sm:$0x3] (!%p2348_p12), %v2876_v0 }
  0x1b   : > { %s2982_s10 = scalar_lea.vmem %s4025_s0, %s2673_s7 }
  0x1f PF: > { %v2988_v1 = vld [vmem:[%s2982_s10 + $0xc] sm:$0xf]  ;;  %v2991_v2 = vld [vmem:[%s2982_s10 + $0x10] sm:$0xf]  ;;  %vm401_vm0 = vcmask 31744   ;;  %vm934_vm1 = vcmask 1042432  }
  0x20   : > { %v2350_v3 = vcombine.low %v2988_v1, %v2991_v2  ;;  %v446_v4 = vshrl.u32 %v2988_v1, 16  ;;  %v449_v5 = vshll.u32 %v2988_v1, 16  ;;  %v455_v6 = vshll.u32 %v2991_v2, 16  ;;  %v2999_v7 = vld [vmem:[%s2982_s10 + $0x18] sm:$0xf]  ;;  %s2877_s12 = smov 12  }
  0x21   : > { %v459_v8 = vshrl.u32 %v2991_v2, 16  ;;  %v3003_v9 = vld [vmem:[%s2982_s10 + $0x1c] sm:$0xf]  ;;  %v470_v10 = vshrl.u32 %v2999_v7, 16  ;;  %v473_v11 = vshll.u32 %v2999_v7, 16  ;;  %vm935_vm4 = vcmask 1046532  }
  0x22   : > { %v448_v12 = vrot.slane %v446_v4, 4  ;;  %v451_v13 = vrot.slane %v449_v5, 5  ;;  %1167 = vrot.lane.b32.xlu0 %v2350_v3, %s2877_s12  ;;  %403 = vst.msk [vmem:[#allocation2 + $0x8] sm:$0xff] %vm401_vm0, %v2350_v3  ;;  %v3011_v14 = vcombine.low %v2999_v7, %v3003_v9  ;;  %v483_v15 = vshrl.u32 %v3003_v9, 16  ;;  %v3015_v16 = vld [vmem:[%s2982_s10] sm:$0xf]  ;;  %vm3030_vm5 = vmor %vm934_vm1, %vm935_vm4 }
  0x23   : > { %v461_v17 = vrot.slane %v459_v8, 4  ;;  %v3018_v18 = vld [vmem:[%s2982_s10 + $0x4] sm:$0xf]  ;;  %v253_v19 = vld [vmem:[%s2982_s10 + $0x8] sm:$0x1]  ;;  %v422_v20 = vshrl.u32 %v3015_v16, 16 }
  0x24   : > { %1169 = vrot.lane.b32.xlu1 %v3011_v14, %s2877_s12  ;;  %404 = vst.msk [vmem:[#allocation2 + $0x10] sm:$0xff] %vm401_vm0, %v3011_v14  ;;  %vm418_vm2 = vsmask.f32 3328  ;;  %vm419_vm3 = vsmask.f32 7440  ;;  %v425_v21 = vshll.u32 %v3015_v16, 16  ;;  %v452_v35 = vor.u32 %v451_v13, %v448_v12 }
  0x25   : > { %v431_v22 = vshll.u32 %v3018_v18, 16  ;;  %v424_v23 = vrot.slane %v422_v20, 4  ;;  %v435_v24 = vshrl.u32 %v3018_v18, 16  ;;  %v441_v25 = vshll.u32 %v253_v19, 16  ;;  %v256_v31 = vld [vmem:[%s2982_s10 + $0x14] sm:$0x1]  ;;  %vm3041_vm6 = vmor %vm418_vm2, %vm419_vm3 }
  0x26   : > { %v427_v26 = vrot.slane %v425_v21, 5  ;;  %v2381_v29 = vrot.slane %v3015_v16, 9  ;;  %v939_v30 = vrot.slane %v3018_v18, 5  ;;  %v942_v34 = vrot.slane %v253_v19, 5  ;;  %v259_v57 = vld [vmem:[%s2982_s10 + $0x20] sm:$0x1] }
  0x27   : > { %v433_v27 = vrot.slane %v431_v22, 5  ;;  %v437_v32 = vrot.slane %v435_v24, 4  ;;  %v443_v33 = vrot.slane %v441_v25, 5  ;;  %v457_v39 = vrot.slane %v455_v6, 5  ;;  %s2878_s13 = smov 8   ;;  %s2879_s14 = smov 4  }
  0x28   : > { %v428_v36 = vor.u32 %v427_v26, %v424_v23  ;;  %v940_v37 = vsel %vm3030_vm5, %v2381_v29, %v939_v30  ;;  %v941_v38 = vrot.slane %v939_v30, 4  ;;  %v453_v42 = vrot.slane %v452_v35, 4  ;;  %v3065_v5 = vld [vmem:[%s2982_s10 + $0x24] sm:$0xf]  ;;  %v3070_v12 = vld [vmem:[%s2982_s10 + $0x28] sm:$0xf] }
  0x29   : > { %v438_v41 = vor.u32 %v437_v32, %v433_v27  ;;  %v465_v43 = vshll.u32 %v256_v31, 16  ;;  %v2382_v44 = vrot.slane %v2988_v1, 9  ;;  %v462_v47 = vor.u32 %v461_v17, %v457_v39  ;;  %v262_v25 = vld [vmem:[%s2982_s10 + $0x2c] sm:$0x1]  ;;  %s2880_s21 = smov 16   ;;  %s2881_s27 = smov 20  }
  0x2a   : > { %v429_v45 = vrot.slane %v428_v36, 4  ;;  %v943_v46 = vsel %vm3030_vm5, %v941_v38, %v942_v34  ;;  %v946_v48 = vrot.slane %v2991_v2, 5  ;;  %v458_v51 = vsel %vm3041_vm6, %v453_v42, %v457_v39  ;;  %v3100_v42 = vld [vmem:[%s2982_s10 + $0x34] sm:$0xf]  ;;  %s2882_s7 = smov 24   ;;  %s2883_s8 = smov 28  }
  0x2b   : > { %v439_v49 = vrot.slane %v438_v41, 4  ;;  %v2397_v50 = vcombine.low %v940_v37, %v943_v46  ;;  %v467_v52 = vrot.slane %v465_v43, 5  ;;  %v463_v54 = vrot.slane %v462_v47, 4  ;;  %v3097_v41 = vld [vmem:[%s2982_s10 + $0x30] sm:$0xf]  ;;  %s2884_s9 = smov 32  }
  0x2c   : > { %v434_v53 = vsel %vm3041_vm6, %v429_v45, %v433_v27  ;;  %v947_v55 = vsel %vm3030_vm5, %v2382_v44, %v946_v48  ;;  %v948_v56 = vrot.slane %v946_v48, 4  ;;  %v949_v59 = vrot.slane %v256_v31, 5 }
  0x2d   : > { %v444_v58 = vsel %vm3041_vm6, %v439_v49, %v443_v33  ;;  %1097 = vrot.lane.b32.xlu1 %v2397_v50, %s2878_s13  ;;  %v472_v60 = vrot.slane %v470_v10, 4  ;;  %v475_v61 = vrot.slane %v473_v11, 5  ;;  %v468_v63 = vsel %vm3041_vm6, %v463_v54, %v467_v52  ;;  %v2756_v49 = vld [vmem:[%s4026_s1] sm:$0xff]   ;;  %v3123_v54 = vld [vmem:[%s2982_s10 + $0x3c] sm:$0xf] }
  0x2e   : > { %v2365_v62 = vcombine.low %v434_v53, %v444_v58  ;;  %v479_v0 = vshll.u32 %v3003_v9, 16  ;;  %v485_v1 = vrot.slane %v483_v15, 4  ;;  %v950_v2 = vsel %vm3030_vm5, %v948_v56, %v949_v59  ;;  %2627 = vmatprep.subr.bf16.mxu0 %v2756_v49  ;;  %v2757_v59 = vld [vmem:[%s4026_s1 + $0x8] sm:$0xff]   ;;  %2665 = vmatprep.subr.bf16.mxu1 %v2756_v49 }
  0x2f   : > { %v476_v3 = vor.u32 %v475_v61, %v472_v60  ;;  %v489_v4 = vshll.u32 %v259_v57, 16  ;;  %v2366_v6 = vcombine.low %v458_v51, %v468_v63  ;;  %v2398_v8 = vcombine.low %v947_v55, %v950_v2  ;;  %v3119_v51 = vld [vmem:[%s2982_s10 + $0x38] sm:$0x1]  ;;  %v3126_v55 = vld [vmem:[%s2982_s10 + $0x40] sm:$0xf]  ;;  %2628 = vmatpush3.bf16.msra.mxu0 %v2756_v49  ;;  %2668 = vmatpush3.bf16.msra.mxu1 %v2756_v49 }
  0x30   : > { %853 = vrot.lane.b32.xlu0 %v2365_v62, %s2879_s14  ;;  %v481_v10 = vrot.slane %v479_v0, 5  ;;  %v953_v11 = vrot.slane %v3003_v9, 5  ;;  %v2383_v17 = vrot.slane %v2999_v7, 9  ;;  %v3075_v19 = vcombine.low %v3065_v5, %v3070_v12  ;;  %2629 = vmatprep.subr.bf16.mxu0 %v2757_v59 }
  0x31   : > { %v477_v13 = vrot.slane %v476_v3, 4  ;;  %v491_v15 = vrot.slane %v489_v4, 5  ;;  %1099 = vrot.lane.b32.xlu1 %v2398_v8, %s2878_s13  ;;  %v956_v22 = vrot.slane %v259_v57, 5  ;;  %v494_v23 = vshrl.u32 %v3065_v5, 16  ;;  %2666 = vmatprep.subr.bf16.mxu1 %v2757_v59 }
  0x32   : > { %v486_v20 = vor.u32 %v485_v1, %v481_v10  ;;  %v955_v21 = vrot.slane %v953_v11, 4  ;;  %v497_v24 = vshll.u32 %v3065_v5, 16  ;;  %v507_v9 = vshrl.u32 %v3070_v12, 16  ;;  %405 = vst.msk [vmem:[#allocation2 + $0x18] sm:$0xff] %vm401_vm0, %v3075_v19 }
  0x33   : > { %v503_v7 = vshll.u32 %v3070_v12, 16  ;;  %v482_v26 = vsel %vm3041_vm6, %v477_v13, %v481_v10  ;;  %v496_v29 = vrot.slane %v494_v23, 4  ;;  %v954_v34 = vsel %vm3030_vm5, %v2383_v17, %v953_v11  ;;  %2630 = vmatpush3.bf16.msra.mxu0 %v2757_v59  ;;  %v3165_v13 = vld [vmem:[%s2982_s10 + $0x48] sm:$0xf]  ;;  %2669 = vmatpush3.bf16.msra.mxu1 %v2757_v59  ;;  %v3177_v23 = vld [vmem:[%s2982_s10 + $0x44] sm:$0x1] }
  0x34   : > { %855 = vrot.lane.b32.xlu0 %v2366_v6, %s2879_s14  ;;  %v487_v27 = vrot.slane %v486_v20, 4  ;;  %v499_v30 = vrot.slane %v497_v24, 5  ;;  %v509_v32 = vrot.slane %v507_v9, 4  ;;  %v957_v35 = vsel %vm3030_vm5, %v955_v21, %v956_v22  ;;  %v3170_v21 = vld [vmem:[%s2982_s10 + $0x4c] sm:$0xf] }
  0x35   : > { %v505_v31 = vrot.slane %v503_v7, 5  ;;  %v513_v36 = vshll.u32 %v262_v25, 16  ;;  %v960_v43 = vrot.slane %v3070_v12, 5  ;;  %v3106_v44 = vcombine.low %v3097_v41, %v3100_v42 }
  0x36   : > { %v492_v33 = vsel %vm3041_vm6, %v487_v27, %v491_v15  ;;  %v500_v38 = vor.u32 %v499_v30, %v496_v29  ;;  %v3110_v45 = vcombine.low %v954_v34, %v957_v35  ;;  %v2384_v50 = vrot.slane %v3065_v5, 9 }
  0x37   : > { %v3094_v37 = vcombine.low %v482_v26, %v492_v33  ;;  %v510_v39 = vor.u32 %v509_v32, %v505_v31  ;;  %v515_v48 = vrot.slane %v513_v36, 5  ;;  %406 = vst.msk [vmem:[#allocation2 + $0x20] sm:$0xff] %vm401_vm0, %v3106_v44  ;;  %v962_v52 = vrot.slane %v960_v43, 4  ;;  %v3196_v33 = vld [vmem:[%s2982_s10 + $0x50] sm:$0x1] }
  0x38   : > { %1259 = vrot.lane.b32.xlu0 %v2366_v6, %s2880_s21  ;;  %v501_v46 = vrot.slane %v500_v38, 4  ;;  %v963_v53 = vrot.slane %v262_v25, 5  ;;  %v518_v56 = vshrl.u32 %v3097_v41, 16  ;;  %v521_v57 = vshll.u32 %v3097_v41, 16 }
  0x39   : > { %1261 = vrot.lane.b32.xlu1 %v3094_v37, %s2880_s21  ;;  %v511_v47 = vrot.slane %v510_v39, 4  ;;  %v531_v58 = vshrl.u32 %v3100_v42, 16  ;;  %v527_v62 = vshll.u32 %v3100_v42, 16  ;;  %v3143_v63 = vcombine.low %v3123_v54, %v3126_v55 }
  0x3a   : > { %v506_v60 = vsel %vm3041_vm6, %v501_v46, %v505_v31  ;;  %v961_v0 = vsel %vm3030_vm5, %v2384_v50, %v960_v43  ;;  %v542_v1 = vshrl.u32 %v3123_v54, 16  ;;  %v545_v2 = vshll.u32 %v3123_v54, 16 }
  0x3b   : > { %v516_v61 = vsel %vm3041_vm6, %v511_v47, %v515_v48  ;;  %v964_v3 = vsel %vm3030_vm5, %v962_v52, %v963_v53  ;;  %v537_v4 = vshll.u32 %v3119_v51, 16  ;;  %v555_v5 = vshrl.u32 %v3126_v55, 16  ;;  %407 = vst.msk [vmem:[#allocation2 + $0x28] sm:$0xff] %vm401_vm0, %v3143_v63  ;;  %v3207_v47 = vld [vmem:[%s2982_s10 + $0x54] sm:$0xf] }
  0x3c   : > { %1335 = vrot.lane.b32.xlu0 %v2398_v8, %s2881_s27  ;;  %v551_v6 = vshll.u32 %v3126_v55, 16  ;;  %v3160_v8 = vcombine.low %v506_v60, %v516_v61  ;;  %v523_v10 = vrot.slane %v521_v57, 5  ;;  %v3162_v11 = vrot.slane %v527_v62, 5  ;;  %v3216_v53 = vld [vmem:[%s2982_s10 + $0x58] sm:$0xf] }
  0x3d   : > { %1337 = vrot.lane.b32.xlu1 %v3110_v45, %s2881_s27  ;;  %v533_v12 = vrot.slane %v531_v58, 4  ;;  %v3167_v15 = vcombine.low %v961_v0, %v964_v3  ;;  %v544_v17 = vrot.slane %v542_v1, 4  ;;  %v547_v20 = vrot.slane %v545_v2, 5 }
  0x3e   : > { %v3174_v22 = vrot.slane %v537_v4, 5  ;;  %v3179_v24 = vrot.slane %v551_v6, 5  ;;  %v557_v9 = vrot.slane %v555_v5, 4  ;;  %v3183_v25 = vcombine.low %v3165_v13, %v3170_v21 }
  0x3f   : > { %v2385_v26 = vrot.slane %v3097_v41, 9  ;;  %v566_v27 = vshrl.u32 %v3165_v13, 16  ;;  %v569_v29 = vshll.u32 %v3165_v13, 16  ;;  %v534_v30 = vor.u32 %v533_v12, %v3162_v11 }
  0x40   : > { %1405 = vrot.lane.b32.xlu0 %v3011_v14, %s2882_s7  ;;  %v520_v14 = vrot.slane %v518_v56, 4  ;;  %v967_v31 = vrot.slane %v3100_v42, 5  ;;  %v579_v32 = vshrl.u32 %v3170_v21, 16  ;;  %408 = vst.msk [vmem:[#allocation2 + $0x30] sm:$0xff] %vm401_vm0, %v3183_v25  ;;  %v575_v34 = vshll.u32 %v3170_v21, 16 }
  0x41   : > { %1407 = vrot.lane.b32.xlu1 %v3075_v19, %s2882_s7  ;;  %v548_v35 = vor.u32 %v547_v20, %v544_v17  ;;  %v561_v36 = vshll.u32 %v3177_v23, 16  ;;  %v568_v38 = vrot.slane %v566_v27, 4  ;;  %v571_v39 = vrot.slane %v569_v29, 5  ;;  %v3262_v27 = vld [vmem:[%s2982_s10 + $0x64] sm:$0xf] }
  0x42   : > { %v524_v7 = vor.u32 %v523_v10, %v520_v14  ;;  %v558_v41 = vor.u32 %v557_v9, %v3179_v24  ;;  %v974_v42 = vrot.slane %v3126_v55, 5  ;;  %v3204_v43 = vrot.slane %v575_v34, 5 }
  0x43   : > { %v581_v46 = vrot.slane %v579_v32, 4  ;;  %v968_v49 = vsel %vm3030_vm5, %v2385_v26, %v967_v31  ;;  %v970_v50 = vrot.slane %v3119_v51, 5  ;;  %v585_v52 = vshll.u32 %v3196_v33, 16  ;;  %v3259_v26 = vld [vmem:[%s2982_s10 + $0x60] sm:$0xf] }
  0x44   : > { %1497 = vrot.lane.b32.xlu0 %v3094_v37, %s2883_s8  ;;  %v525_v48 = vrot.slane %v524_v7, 4  ;;  %v572_v56 = vor.u32 %v571_v39, %v568_v38  ;;  %v981_v57 = vrot.slane %v3170_v21, 5  ;;  %v3222_v58 = vcombine.low %v3207_v47, %v3216_v53  ;;  %v3256_v7 = vld [vmem:[%s2982_s10 + $0x5c] sm:$0x1] }
  0x45   : > { %1499 = vrot.lane.b32.xlu1 %v3160_v8, %s2883_s8  ;;  %v582_v55 = vor.u32 %v581_v46, %v3204_v43  ;;  %v969_v59 = vrot.slane %v967_v31, 4  ;;  %v563_v60 = vrot.slane %v561_v36, 5  ;;  %v2386_v61 = vrot.slane %v3123_v54, 9 }
  0x46   : > { %v549_v51 = vrot.slane %v548_v35, 4  ;;  %v559_v62 = vrot.slane %v558_v41, 4  ;;  %v976_v0 = vrot.slane %v974_v42, 4  ;;  %v977_v1 = vrot.slane %v3177_v23, 5  ;;  %409 = vst.msk [vmem:[#allocation2 + $0x38] sm:$0xff] %vm401_vm0, %v3222_v58 }
  0x47   : > { %v587_v2 = vrot.slane %v585_v52, 5  ;;  %v2387_v3 = vrot.slane %v3165_v13, 9  ;;  %v590_v54 = vshrl.u32 %v3207_v47, 16  ;;  %v593_v4 = vshll.u32 %v3207_v47, 16  ;;  %v3304_v52 = vld [vmem:[%s2982_s10 + $0x68] sm:$0x1] }
  0x48   : > { %1573 = vrot.lane.b32.xlu0 %v3110_v45, %s2884_s9  ;;  %v573_v5 = vrot.slane %v572_v56, 4  ;;  %v583_v6 = vrot.slane %v582_v55, 4  ;;  %v983_v14 = vrot.slane %v981_v57, 4  ;;  %v984_v10 = vrot.slane %v3196_v33, 5 }
  0x49   : > { %857 = vrot.lane.b32.xlu1 %v3094_v37, %s2879_s14  ;;  %v535_v37 = vrot.slane %v534_v30, 4  ;;  %v530_v12 = vsel %vm3041_vm6, %v525_v48, %v3162_v11  ;;  %v971_v17 = vsel %vm3030_vm5, %v969_v59, %v970_v50  ;;  %v603_v13 = vshrl.u32 %v3216_v53, 16 }
  0x4a   : > { %v599_v20 = vshll.u32 %v3216_v53, 16  ;;  %v554_v23 = vsel %vm3041_vm6, %v549_v51, %v3179_v24  ;;  %v975_v11 = vsel %vm3030_vm5, %v2386_v61, %v974_v42  ;;  %v978_v9 = vsel %vm3030_vm5, %v976_v0, %v977_v1  ;;  %v278_v42 = vld [vmem:[%s2982_s10 + $0x6c] sm:$0xf] }
  0x4b   : > { %v540_v21 = vsel %vm3041_vm6, %v535_v37, %v3174_v22  ;;  %v592_v22 = vrot.slane %v590_v54, 4  ;;  %v595_v24 = vrot.slane %v593_v4, 5  ;;  %v3270_v29 = vcombine.low %v3259_v26, %v3262_v27  ;;  %v280_v54 = vld [vmem:[%s2982_s10 + $0x74] sm:$0x1] }
  0x4c   : > { %1575 = vrot.lane.b32.xlu0 %v3167_v15, %s2884_s9  ;;  %v578_v30 = vsel %vm3041_vm6, %v573_v5, %v3204_v43  ;;  %v588_v31 = vsel %vm3041_vm6, %v583_v6, %v587_v2  ;;  %v982_v32 = vsel %vm3030_vm5, %v2387_v3, %v981_v57  ;;  %v985_v33 = vsel %vm3030_vm5, %v983_v14, %v984_v10 }
  0x4d   : > { %859 = vrot.lane.b32.xlu1 %v3160_v8, %s2879_s14  ;;  %v3281_v34 = vrot.slane %v599_v20, 5  ;;  %v605_v35 = vrot.slane %v603_v13, 4  ;;  %v609_v36 = vshll.u32 %v3256_v7, 16  ;;  %410 = vst.msk [vmem:[#allocation2 + $0x40] sm:$0xff] %vm401_vm0, %v3270_v29  ;;  %v3288_v38 = vcombine.low %v530_v12, %v540_v21 }
  0x4e   : > { %v3290_v39 = vcombine.low %v968_v49, %v971_v17  ;;  %v3292_v41 = vcombine.low %v975_v11, %v978_v9  ;;  %v3299_v46 = vcombine.low %v578_v30, %v588_v31  ;;  %v3301_v48 = vcombine.low %v982_v32, %v985_v33  ;;  %v282_v31 = vld [vmem:[%s2982_s10 + $0x7c] sm:$0xf] }
  0x4f   : > { %v596_v50 = vor.u32 %v595_v24, %v592_v22  ;;  %v2388_v56 = vrot.slane %v3207_v47, 9  ;;  %v2389_v49 = vrot.slane %v3259_v26, 9  ;;  %v995_v55 = vrot.slane %v3262_v27, 5 }
  0x50   : > { %1101 = vrot.lane.b32.xlu0 %v3110_v45, %s2878_s13  ;;  %v564_v45 = vsel %vm3041_vm6, %v559_v62, %v563_v60  ;;  %v998_v57 = vrot.slane %v3304_v52, 5  ;;  %v606_v37 = vor.u32 %v605_v35, %v3281_v34  ;;  %v3312_v59 = vrot.slane %v609_v36, 5 }
  0x51   : > { %1103 = vrot.lane.b32.xlu1 %v3167_v15, %s2878_s13  ;;  %v3297_v43 = vcombine.low %v554_v23, %v564_v45  ;;  %v638_v61 = vshrl.u32 %v278_v42, 16  ;;  %v996_v47 = vsel %vm3030_vm5, %v2389_v49, %v995_v55  ;;  %v997_v51 = vrot.slane %v995_v55, 4  ;;  %v281_v45 = vld [vmem:[%s2982_s10 + $0x78] sm:$0xf] }
  0x52   : > { %v641_v62 = vshll.u32 %v278_v42, 16  ;;  %v3322_v1 = vrot.slane %v596_v50, 4  ;;  %v988_v2 = vrot.slane %v3216_v53, 5  ;;  %v991_v3 = vrot.slane %v3256_v7, 5 }
  0x53   : > { %v614_v4 = vshrl.u32 %v3259_v26, 16  ;;  %v999_v5 = vsel %vm3030_vm5, %v997_v51, %v998_v57  ;;  %v640_v6 = vrot.slane %v638_v61, 4  ;;  %v617_v10 = vshll.u32 %v3259_v26, 16 }
  0x54   : > { %1171 = vrot.lane.b32.xlu0 %v3075_v19, %s2877_s12  ;;  %v279_v19 = vld [vmem:[%s2982_s10 + $0x70] sm:$0xf]  ;;  %v643_v14 = vrot.slane %v641_v62, 5  ;;  %v3335_v53 = vcombine.low %v996_v47, %v999_v5  ;;  %v657_v20 = vshll.u32 %v280_v54, 16  ;;  %v3348_v21 = vrot.slane %v988_v2, 4 }
  0x55   : > { %1173 = vrot.lane.b32.xlu1 %v3106_v44, %s2877_s12  ;;  %v3314_v60 = vcombine.low %v278_v42, %v279_v19  ;;  %v651_v0 = vshrl.u32 %v279_v19, 16  ;;  %v647_v12 = vshll.u32 %v279_v19, 16  ;;  %v2390_v11 = vrot.slane %v278_v42, 9 }
  0x56   : > { %v644_v13 = vor.u32 %v643_v14, %v640_v6  ;;  %v1002_v9 = vrot.slane %v279_v19, 5  ;;  %v627_v22 = vshrl.u32 %v3262_v27, 16  ;;  %v1005_v30 = vrot.slane %v280_v54, 5  ;;  %v285_v54 = vld [vmem:[%s2982_s10 + $0x88] sm:$0xf] }
  0x57   : > { %411 = vst.msk [vmem:[#allocation2 + $0x48] sm:$0xff] %vm401_vm0, %v3314_v60  ;;  %v653_v17 = vrot.slane %v651_v0, 4  ;;  %v649_v23 = vrot.slane %v647_v12, 5  ;;  %v659_v33 = vrot.slane %v657_v20, 5  ;;  %v3363_v50 = vcombine.low %v281_v45, %v282_v31 }
  0x58   : > { %1263 = vrot.lane.b32.xlu0 %v3160_v8, %s2880_s21  ;;  %v2349_v8 = vcombine.low %v3015_v16, %v3018_v18  ;;  %v3340_v16 = vrot.slane %v606_v37, 4  ;;  %v3344_v18 = vsel %vm3030_vm5, %v2388_v56, %v988_v2  ;;  %v645_v24 = vrot.slane %v644_v13, 4  ;;  %v283_v56 = vld [vmem:[%s2982_s10 + $0x80] sm:$0x1] }
  0x59   : > { %1265 = vrot.lane.b32.xlu1 %v3288_v38, %s2880_s21  ;;  %v654_v32 = vor.u32 %v653_v17, %v649_v23  ;;  %v1003_v35 = vsel %vm3030_vm5, %v2390_v11, %v1002_v9  ;;  %v1004_v36 = vrot.slane %v1002_v9, 4  ;;  %v665_v19 = vshll.u32 %v281_v45, 16  ;;  %412 = vst.msk [vmem:[#allocation2 + $0x50] sm:$0xff] %vm401_vm0, %v3363_v50 }
  0x5a   : > { %402 = vst.msk [vmem:[#allocation2] sm:$0xff] %vm401_vm0, %v2349_v8  ;;  %v650_v42 = vsel %vm3041_vm6, %v645_v24, %v649_v23  ;;  %v623_v49 = vshll.u32 %v3262_v27, 16  ;;  %v671_v51 = vshll.u32 %v282_v31, 16  ;;  %v612_v62 = vsel %vm3041_vm6, %v3340_v16, %v3312_v59  ;;  %v284_v8 = vld [vmem:[%s2982_s10 + $0x84] sm:$0xf] }
  0x5b   : > { %v655_v55 = vrot.slane %v654_v32, 4  ;;  %v1006_v57 = vsel %vm3030_vm5, %v1004_v36, %v1005_v30  ;;  %v667_v47 = vrot.slane %v665_v19, 5  ;;  %v681_v2 = vshll.u32 %v283_v56, 16  ;;  %v2759_v59 = vld [vmem:[%s4026_s1 + $0x10] ss:$0 sps:$4 sm:$0x33]  }
  0x5c   : > { %1339 = vrot.lane.b32.xlu0 %v3167_v15, %s2881_s27  ;;  %v602_v15 = vsel %vm3041_vm6, %v3322_v1, %v3281_v34  ;;  %v662_v34 = vshrl.u32 %v281_v45, 16  ;;  %v3371_v37 = vcombine.low %v1003_v35, %v1006_v57  ;;  %v673_v14 = vrot.slane %v671_v51, 5 }
  0x5d   : > { %1341 = vrot.lane.b32.xlu1 %v3290_v39, %s2881_s27  ;;  %v660_v0 = vsel %vm3041_vm6, %v655_v55, %v659_v33  ;;  %v2391_v12 = vrot.slane %v281_v45, 9  ;;  %v683_v17 = vrot.slane %v681_v2, 5  ;;  %v1009_v16 = vrot.slane %v282_v31, 5  ;;  %v286_v33 = vld [vmem:[%s2982_s10 + $0x8c] sm:$0x1] }
  0x5e   : > { %v664_v61 = vrot.slane %v662_v34, 4  ;;  %v3385_v5 = vcombine.low %v650_v42, %v660_v0  ;;  %v1012_v13 = vrot.slane %v283_v56, 5  ;;  %v3392_v20 = vcombine.low %v284_v8, %v285_v54 }
  0x5f   : > { %v686_v9 = vshrl.u32 %v284_v8, 16  ;;  %v689_v24 = vshll.u32 %v284_v8, 16  ;;  %v1010_v45 = vsel %vm3030_vm5, %v2391_v12, %v1009_v16  ;;  %v1011_v30 = vrot.slane %v1009_v16, 4 }
  0x60   : > { %1409 = vrot.lane.b32.xlu0 %v3106_v44, %s2882_s7  ;;  %v675_v44 = vshrl.u32 %v282_v31, 16  ;;  %v668_v6 = vor.u32 %v667_v47, %v664_v61  ;;  %v699_v32 = vshrl.u32 %v285_v54, 16  ;;  %413 = vst.msk [vmem:[#allocation2 + $0x58] sm:$0xff] %vm401_vm0, %v3392_v20  ;;  %vm1730_vm7 = vcmask 1041408   ;;  %v287_v47 = vld [vmem:[%s2982_s10 + $0x90] sm:$0xf] }
  0x61   : > { %1411 = vrot.lane.b32.xlu1 %v3143_v63, %s2882_s7  ;;  %v3401_v31 = vcombine.low %v602_v15, %v612_v62  ;;  %2671 = vmatprep.subr.msk.bf16.mxu0 %vm1730_vm7, %v2759_v59  ;;  %v1732_v42 = vsel %vm1730_vm7, %v2759_v59, 0  ;;  %v1013_v34 = vsel %vm3030_vm5, %v1011_v30, %v1012_v13  ;;  %v688_v19 = vrot.slane %v686_v9, 4 }
  0x62   : > { %v677_v1 = vrot.slane %v675_v44, 4  ;;  %v669_v23 = vrot.slane %v668_v6, 4  ;;  %2632 = vmatpush3.bf16.msra.mxu0 %v1732_v42  ;;  %v691_v56 = vrot.slane %v689_v24, 5  ;;  %v695_v15 = vshll.u32 %v285_v54, 16  ;;  %2672 = vmatprep.subr.msk.bf16.mxu1 %vm1730_vm7, %v2759_v59 }
  0x63   : > { %v3413_v57 = vcombine.low %v1010_v45, %v1013_v34  ;;  %v701_v44 = vrot.slane %v699_v32, 4  ;;  %v705_v61 = vshll.u32 %v286_v33, 16  ;;  %v2392_v0 = vrot.slane %v284_v8, 9  ;;  %2670 = vmatpush3.bf16.msra.mxu1 %v1732_v42  ;;  %v290_v34 = vld [vmem:[%s2982_s10 + $0x9c] sm:$0xf] }
  0x64   : > { %1501 = vrot.lane.b32.xlu0 %v3288_v38, %s2883_s8  ;;  %v678_v11 = vor.u32 %v677_v1, %v673_v14  ;;  %v674_v35 = vsel %vm3041_vm6, %v669_v23, %v673_v14  ;;  %v697_v62 = vrot.slane %v695_v15, 5  ;;  %v288_v1 = vld [vmem:[%s2982_s10 + $0x94] sm:$0xf]  ;;  %v1016_v6 = vrot.slane %v285_v54, 5  ;;  %v289_v23 = vld [vmem:[%s2982_s10 + $0x98] sm:$0x1] }
  0x65   : > { %1503 = vrot.lane.b32.xlu1 %v3297_v43, %s2883_s8  ;;  %v707_v2 = vrot.slane %v705_v61, 5  ;;  %v1019_v14 = vrot.slane %v286_v33, 5  ;;  %v3422_v12 = vcombine.low %v287_v47, %v288_v1  ;;  %v710_v16 = vshrl.u32 %v287_v47, 16 }
  0x66   : > { %v679_v36 = vrot.slane %v678_v11, 4  ;;  %v713_v13 = vshll.u32 %v287_v47, 16  ;;  %v1017_v8 = vsel %vm3030_vm5, %v2392_v0, %v1016_v6  ;;  %v1018_v11 = vrot.slane %v1016_v6, 4 }
  0x67   : > { %v723_v9 = vshrl.u32 %v288_v1, 16  ;;  %414 = vst.msk [vmem:[#allocation2 + $0x60] sm:$0xff] %vm401_vm0, %v3422_v12  ;;  %v719_v54 = vshll.u32 %v288_v1, 16  ;;  %v712_v30 = vrot.slane %v710_v16, 4  ;;  %v729_v42 = vshll.u32 %v289_v23, 16 }
  0x68   : > { %1577 = vrot.lane.b32.xlu0 %v3290_v39, %s2884_s9  ;;  %v684_v55 = vsel %vm3041_vm6, %v679_v36, %v683_v17  ;;  %v702_v17 = vor.u32 %v701_v44, %v697_v62  ;;  %v715_v32 = vrot.slane %v713_v13, 5  ;;  %v1020_v33 = vsel %vm3030_vm5, %v1018_v11, %v1019_v14 }
  0x69   : > { %861 = vrot.lane.b32.xlu1 %v3288_v38, %s2879_s14  ;;  %v3417_v51 = vcombine.low %v674_v35, %v684_v55  ;;  %v692_v38 = vor.u32 %v691_v56, %v688_v19  ;;  %v721_v35 = vrot.slane %v719_v54, 5  ;;  %v725_v36 = vrot.slane %v723_v9, 4 }
  0x6a   : > { %v703_v45 = vrot.slane %v702_v17, 4  ;;  %v3442_v56 = vcombine.low %v1017_v8, %v1020_v33  ;;  %v716_v15 = vor.u32 %v715_v32, %v712_v30  ;;  %v2393_v55 = vrot.slane %v287_v47, 9  ;;  %v292_v17 = vld [vmem:[%s2982_s10 + $0xa4] sm:$0x1] }
  0x6b   : > { %v693_v59 = vrot.slane %v692_v38, 4  ;;  %v731_v61 = vrot.slane %v729_v42, 5  ;;  %v1023_v38 = vrot.slane %v288_v1, 5  ;;  %v1026_v6 = vrot.slane %v289_v23, 5 }
  0x6c   : > { %1579 = vrot.lane.b32.xlu0 %v3292_v41, %s2884_s9  ;;  %v708_v19 = vsel %vm3041_vm6, %v703_v45, %v707_v2  ;;  %v717_v0 = vrot.slane %v716_v15, 4  ;;  %v737_v13 = vshll.u32 %v290_v34, 16  ;;  %v293_v45 = vld [vmem:[%s2982_s10 + $0xa8] sm:$0xf]  ;;  %vm901_vm8 = vcmask 64544  }
  0x6d   : > { %863 = vrot.lane.b32.xlu1 %v3297_v43, %s2879_s14  ;;  %v698_v24 = vsel %vm3041_vm6, %v693_v59, %v697_v62  ;;  %v291_v62 = vld [vmem:[%s2982_s10 + $0xa0] sm:$0xf]  ;;  %v734_v59 = vshrl.u32 %v290_v34, 16  ;;  %v1024_v47 = vsel %vm3030_vm5, %v2393_v55, %v1023_v38  ;;  %v1025_v16 = vrot.slane %v1023_v38, 4  ;;  %v294_v55 = vld [vmem:[%s2982_s10 + $0xac] sm:$0xf] }
  0x6e   : > { %v3444_v44 = vcombine.low %v698_v24, %v708_v19  ;;  %v3447_v14 = vcombine.low %v290_v34, %v291_v62  ;;  %v722_v1 = vsel %vm3041_vm6, %v717_v0, %v721_v35  ;;  %v747_v23 = vshrl.u32 %v291_v62, 16 }
  0x6f   : > { %v736_v8 = vrot.slane %v734_v59, 4  ;;  %v743_v11 = vshll.u32 %v291_v62, 16  ;;  %v1027_v9 = vsel %vm3030_vm5, %v1025_v16, %v1026_v6  ;;  %v739_v54 = vrot.slane %v737_v13, 5  ;;  %v295_v6 = vld [vmem:[%s2982_s10 + $0xb0] sm:$0x1] }
  0x70   : > { %1105 = vrot.lane.b32.xlu0 %v3290_v39, %s2878_s13  ;;  %v726_v39 = vor.u32 %v725_v36, %v721_v35  ;;  %415 = vst.msk [vmem:[#allocation2 + $0x68] sm:$0xff] %vm401_vm0, %v3447_v14  ;;  %v753_v24 = vshll.u32 %v292_v17, 16  ;;  %v3467_v32 = vcombine.low %v1024_v47, %v1027_v9  ;;  %v749_v35 = vrot.slane %v747_v23, 4 }
  0x71   : > { %1107 = vrot.lane.b32.xlu1 %v3292_v41, %s2878_s13  ;;  %v745_v33 = vrot.slane %v743_v11, 5  ;;  %v740_v36 = vor.u32 %v739_v54, %v736_v8  ;;  %v2394_v19 = vrot.slane %v290_v34, 9  ;;  %v1030_v15 = vrot.slane %v291_v62, 5 }
  0x72   : > { %v727_v2 = vrot.slane %v726_v39, 4  ;;  %v755_v42 = vrot.slane %v753_v24, 5  ;;  %v3474_v38 = vcombine.low %v293_v45, %v294_v55  ;;  %v758_v0 = vshrl.u32 %v293_v45, 16  ;;  %v297_v24 = vld [vmem:[%s2982_s10 + $0xb8] sm:$0xf] }
  0x73   : > { %v750_v39 = vor.u32 %v749_v35, %v745_v33  ;;  %v741_v59 = vrot.slane %v740_v36, 4  ;;  %v1032_v47 = vrot.slane %v1030_v15, 4  ;;  %v771_v34 = vshrl.u32 %v294_v55, 16 }
  0x74   : > { %1175 = vrot.lane.b32.xlu0 %v3143_v63, %s2877_s12  ;;  %v732_v63 = vsel %vm3041_vm6, %v727_v2, %v731_v61  ;;  %v1033_v61 = vrot.slane %v292_v17, 5  ;;  %v1031_v2 = vsel %vm3030_vm5, %v2394_v19, %v1030_v15  ;;  %416 = vst.msk [vmem:[#allocation2 + $0x70] sm:$0xff] %vm401_vm0, %v3474_v38  ;;  %v760_v62 = vrot.slane %v758_v0, 4 }
  0x75   : > { %1177 = vrot.lane.b32.xlu1 %v3183_v25, %s2877_s12  ;;  %v3465_v30 = vcombine.low %v722_v1, %v732_v63  ;;  %v751_v16 = vrot.slane %v750_v39, 4  ;;  %v767_v13 = vshll.u32 %v294_v55, 16  ;;  %v746_v17 = vsel %vm3041_vm6, %v741_v59, %v745_v33 }
  0x76   : > { %v1034_v1 = vsel %vm3030_vm5, %v1032_v47, %v1033_v61  ;;  %v777_v8 = vshll.u32 %v295_v6, 16  ;;  %v773_v54 = vrot.slane %v771_v34, 4  ;;  %v2395_v19 = vrot.slane %v293_v45, 9 }
  0x77   : > { %v756_v11 = vsel %vm3041_vm6, %v751_v16, %v755_v42  ;;  %v3491_v63 = vcombine.low %v1031_v2, %v1034_v1  ;;  %v769_v9 = vrot.slane %v767_v13, 5  ;;  %v1037_v39 = vrot.slane %v294_v55, 5 }
  0x78   : > { %1267 = vrot.lane.b32.xlu0 %v3297_v43, %s2880_s21  ;;  %v761_v43 = vshll.u32 %v293_v45, 16  ;;  %v3495_v35 = vcombine.low %v746_v17, %v756_v11  ;;  %v779_v36 = vrot.slane %v777_v8, 5  ;;  %v1040_v61 = vrot.slane %v295_v6, 5 }
  0x79   : > { %1269 = vrot.lane.b32.xlu1 %v3299_v46, %s2880_s21  ;;  %v774_v15 = vor.u32 %v773_v54, %v769_v9  ;;  %v795_v47 = vshrl.u32 %v297_v24, 16  ;;  %v1038_v45 = vsel %vm3030_vm5, %v2395_v19, %v1037_v39  ;;  %v1039_v34 = vrot.slane %v1037_v39, 4 }
  0x7a   : > { %v763_v23 = vrot.slane %v761_v43, 5  ;;  %v298_v43 = vld [vmem:[%s2982_s10 + $0xbc] sm:$0x1]  ;;  %v791_v55 = vshll.u32 %v297_v24, 16  ;;  %v616_v11 = vrot.slane %v614_v4, 4  ;;  %v1044_v39 = vrot.slane %v297_v24, 5 }
  0x7b   : > { %v775_v16 = vrot.slane %v774_v15, 4  ;;  %v797_v13 = vrot.slane %v795_v47, 4  ;;  %v1041_v1 = vsel %vm3030_vm5, %v1039_v34, %v1040_v61  ;;  %v801_v8 = vshll.u32 %v298_v43, 16 }
  0x7c   : > { %1343 = vrot.lane.b32.xlu0 %v3292_v41, %s2881_s27  ;;  %v296_v41 = vld [vmem:[%s2982_s10 + $0xb4] sm:$0xf]  ;;  %v764_v33 = vor.u32 %v763_v23, %v760_v62  ;;  %v793_v23 = vrot.slane %v791_v55, 5  ;;  %v619_v4 = vrot.slane %v617_v10, 5  ;;  %v625_v61 = vrot.slane %v623_v49, 5 }
  0x7d   : > { %1345 = vrot.lane.b32.xlu1 %v3301_v48, %s2881_s27  ;;  %v3497_v0 = vcombine.low %v296_v41, %v297_v24  ;;  %v782_v59 = vshrl.u32 %v296_v41, 16  ;;  %v785_v2 = vshll.u32 %v296_v41, 16  ;;  %v780_v17 = vsel %vm3041_vm6, %v775_v16, %v779_v36 }
  0x7e   : > { %v765_v42 = vrot.slane %v764_v33, 4  ;;  %v992_v36 = vsel %vm3030_vm5, %v3348_v21, %v991_v3  ;;  %v798_v19 = vor.u32 %v797_v13, %v793_v23  ;;  %v803_v15 = vrot.slane %v801_v8, 5 }
  0x7f   : > { %417 = vst.msk [vmem:[#allocation2 + $0x78] sm:$0xff] %vm401_vm0, %v3497_v0  ;;  %v784_v6 = vrot.slane %v782_v59, 4  ;;  %v787_v62 = vrot.slane %v785_v2, 5  ;;  %v2396_v47 = vrot.slane %v296_v41, 9  ;;  %v1046_v7 = vrot.slane %v1044_v39, 4 }
  0x80   : > { %1413 = vrot.lane.b32.xlu0 %v3183_v25, %s2882_s7  ;;  %v770_v25 = vsel %vm3041_vm6, %v765_v42, %v769_v9  ;;  %v3520_v9 = vcombine.low %v1038_v45, %v1041_v1  ;;  %v629_v42 = vrot.slane %v627_v22, 4  ;;  %v799_v2 = vrot.slane %v798_v19, 4 }
  0x81   : > { %1415 = vrot.lane.b32.xlu1 %v3222_v58, %s2882_s7  ;;  %v3518_v54 = vcombine.low %v770_v25, %v780_v17  ;;  %v788_v33 = vor.u32 %v787_v62, %v784_v6  ;;  %v1047_v16 = vrot.slane %v298_v43, 5  ;;  %v2404_v3 = vcombine.low %v3344_v18, %v992_v36 }
  0x82   : > { %v633_v10 = vshll.u32 %v3304_v52, 16  ;;  %v804_v27 = vsel %vm3041_vm6, %v799_v2, %v803_v15  ;;  %v1045_v21 = vsel %vm3030_vm5, %v2396_v47, %v1044_v39  ;;  %v620_v49 = vor.u32 %v619_v4, %v616_v11 }
  0x83   : > { %v789_v59 = vrot.slane %v788_v33, 4  ;;  %v1048_v22 = vsel %vm3030_vm5, %v1046_v7, %v1047_v16  ;;  %v630_v41 = vor.u32 %v629_v42, %v625_v61  ;;  %vm1145_vm9 = vcmask 97344  }
  0x84   : > { %1505 = vrot.lane.b32.xlu0 %v3299_v46, %s2883_s8  ;;  %v3551_v24 = vcombine.low %v1045_v21, %v1048_v22  ;;  %v635_v43 = vrot.slane %v633_v10, 5  ;;  %vm1215_vm10 = vcmask 130144   ;;  %vm1307_vm11 = vcmask 162944  }
  0x85   : > { %1507 = vrot.lane.b32.xlu1 %v3401_v31, %s2883_s8  ;;  %v794_v26 = vsel %vm3041_vm6, %v789_v59, %v793_v23  ;;  %v631_v52 = vrot.slane %v630_v41, 4  ;;  %vm1383_vm12 = vcmask 195744   ;;  %vm1453_vm13 = vcmask 228544  }
  0x86   : > { %v3549_v18 = vcombine.low %v794_v26, %v804_v27  ;;  %vm1545_vm14 = vcmask 261344   ;;  %vm1621_vm15 = vcmask 294144   ;;  %vm1681_vm0 = vcmask 293888  }
  0x87   : > { %v636_v34 = vsel %vm3041_vm6, %v631_v52, %v635_v43 }
  0x88   : > { %1581 = vrot.lane.b32.xlu0 %v3301_v48, %s2884_s9 }
  0x89   : > { %865 = vrot.lane.b32.xlu1 %v3299_v46, %s2879_s14  ;;  %v621_v46 = vrot.slane %v620_v49, 4 }
  0x8b   : > { %v626_v45 = vsel %vm3041_vm6, %v621_v46, %v625_v61 }
  0x8c   : > { %1583 = vrot.lane.b32.xlu0 %v2404_v3, %s2884_s9  ;;  %v2373_v55 = vcombine.low %v626_v45, %v636_v34  ;;  %v3720_v34 = vld [vmem:[%s2982_s10 + $0xc0] sm:$0xf] }
  0x8d   : > { %867 = vrot.lane.b32.xlu1 %v3401_v31, %s2879_s14 }
  0x90   : > { %1109 = vrot.lane.b32.xlu0 %v3301_v48, %s2878_s13 }
  0x91   : > { %1111 = vrot.lane.b32.xlu1 %v2404_v3, %s2878_s13 }
  0x94   : > { %1179 = vrot.lane.b32.xlu0 %v3222_v58, %s2877_s12  ;;  %v1168_v25 = vpop.permute.xlu0 %1167 }
  0x95   : > { %1181 = vrot.lane.b32.xlu1 %v3270_v29, %s2877_s12 }
  0x96   : > { %v1170_v48 = vpop.permute.xlu1 %1169 }
  0x98   : > { %1271 = vrot.lane.b32.xlu0 %v3401_v31, %s2880_s21 }
  0x99   : > { %1273 = vrot.lane.b32.xlu1 %v2373_v55, %s2880_s21 }
  0x9c   : > { %1347 = vrot.lane.b32.xlu0 %v2404_v3, %s2881_s27 }
  0x9d   : > { %1349 = vrot.lane.b32.xlu1 %v3335_v53, %s2881_s27 }
  0x9f   : > { %v1098_v6 = vpop.permute.xlu1 %1097 }
  0xa0   : > { %1417 = vrot.lane.b32.xlu0 %v3270_v29, %s2882_s7 }
  0xa1   : > { %1419 = vrot.lane.b32.xlu1 %v3314_v60, %s2882_s7 }
  0xa2   : > { %v854_v58 = vpop.permute.xlu0 %853 }
  0xa3   : > { %902 = vst.msk [vmem:[#allocation2] sm:$0xff] %vm901_vm8, %v854_v58  ;;  %v1100_v31 = vpop.permute.xlu1 %1099 }
  0xa4   : > { %1146 = vst.msk [vmem:[#allocation2] sm:$0xff] %vm1145_vm9, %v1098_v6  ;;  %1509 = vrot.lane.b32.xlu0 %v2373_v55, %s2883_s8 }
  0xa5   : > { %1511 = vrot.lane.b32.xlu1 %v3385_v5, %s2883_s8  ;;  %1216 = vst.msk [vmem:[#allocation2] sm:$0xff] %vm1215_vm10, %v1168_v25  ;;  %v1233_v25 = vshrl.u32 %v3720_v34, 16 }
  0xa6   : > { %v856_v29 = vpop.permute.xlu0 %855 }
  0xa7   : > { %903 = vst.msk [vmem:[#allocation2 + $0x8] sm:$0xff] %vm901_vm8, %v856_v29 }
  0xa8   : > { %1147 = vst.msk [vmem:[#allocation2 + $0x8] sm:$0xff] %vm1145_vm9, %v1100_v31  ;;  %1585 = vrot.lane.b32.xlu0 %v3335_v53, %s2884_s9 }
  0xa9   : > { %869 = vrot.lane.b32.xlu1 %v2373_v55, %s2879_s14  ;;  %1217 = vst.msk [vmem:[#allocation2 + $0x8] sm:$0xff] %vm1215_vm10, %v1170_v48  ;;  %v3723_v48 = vld [vmem:[%s2982_s10 + $0xc4] sm:$0xf] }
  0xaa   : > { %v1260_v62 = vpop.permute.xlu0 %1259  ;;  %v1246_v6 = vshrl.u32 %v3723_v48, 16  ;;  %v1242_v58 = vshll.u32 %v3723_v48, 16 }
  0xab   : > { %1308 = vst.msk [vmem:[#allocation2] sm:$0xff] %vm1307_vm11, %v1260_v62  ;;  %v1262_v13 = vpop.permute.xlu1 %1261 }
  0xac   : > { %1309 = vst.msk [vmem:[#allocation2 + $0x8] sm:$0xff] %vm1307_vm11, %v1262_v13  ;;  %1587 = vrot.lane.b32.xlu0 %v3371_v37, %s2884_s9 }
  0xad   : > { %871 = vrot.lane.b32.xlu1 %v3385_v5, %s2879_s14 }
  0xae   : > { %v1336_v17 = vpop.permute.xlu0 %1335 }
  0xaf   : > { %1384 = vst.msk [vmem:[#allocation2] sm:$0xff] %vm1383_vm12, %v1336_v17  ;;  %v1338_v1 = vpop.permute.xlu1 %1337  ;;  %v1244_v17 = vrot.slane %v1242_v58, 5 }
  0xb0   : > { %1385 = vst.msk [vmem:[#allocation2 + $0x8] sm:$0xff] %vm1383_vm12, %v1338_v1  ;;  %1113 = vrot.lane.b32.xlu0 %v3335_v53, %s2878_s13  ;;  %v1248_v1 = vrot.slane %v1246_v6, 4 }
  0xb1   : > { %1115 = vrot.lane.b32.xlu1 %v3371_v37, %s2878_s13 }
  0xb2   : > { %v1406_v23 = vpop.permute.xlu0 %1405 }
  0xb3   : > { %1454 = vst.msk [vmem:[#allocation2] sm:$0xff] %vm1453_vm13, %v1406_v23  ;;  %v1408_v8 = vpop.permute.xlu1 %1407 }
  0xb4   : > { %1455 = vst.msk [vmem:[#allocation2 + $0x8] sm:$0xff] %vm1453_vm13, %v1408_v8  ;;  %1183 = vrot.lane.b32.xlu0 %v3314_v60, %s2877_s12 }
  0xb5   : > { %1185 = vrot.lane.b32.xlu1 %v3363_v50, %s2877_s12 }
  0xb6   : > { %v1498_v11 = vpop.permute.xlu0 %1497 }
  0xb7   : > { %1546 = vst.msk [vmem:[#allocation2] sm:$0xff] %vm1545_vm14, %v1498_v11  ;;  %v1500_v53 = vpop.permute.xlu1 %1499  ;;  %v301_v11 = vld [vmem:[%s2982_s10 + $0xc8] sm:$0x1] }
  0xb8   : > { %1547 = vst.msk [vmem:[#allocation2 + $0x8] sm:$0xff] %vm1545_vm14, %v1500_v53  ;;  %1275 = vrot.lane.b32.xlu0 %v3385_v5, %s2880_s21 }
  0xb9   : > { %1277 = vrot.lane.b32.xlu1 %v3417_v51, %s2880_s21 }
  0xba   : > { %v1574_v33 = vpop.permute.xlu0 %1573 }
  0xbb   : > { %1622 = vst.msk [vmem:[#allocation2] sm:$0xff] %vm1621_vm15, %v1574_v33  ;;  %v858_v60 = vpop.permute.xlu1 %857 }
  0xbc   : > { %904 = vst.msk [vmem:[#allocation2 + $0x10] sm:$0xff] %vm901_vm8, %v858_v60  ;;  %1351 = vrot.lane.b32.xlu0 %v3371_v37, %s2881_s27  ;;  %v1249_v60 = vor.u32 %v1248_v1, %v1244_v17 }
  0xbd   : > { %1353 = vrot.lane.b32.xlu1 %v3413_v57, %s2881_s27 }
  0xbe   : > { %v1576_v36 = vpop.permute.xlu0 %1575 }
  0xbf   : > { %1623 = vst.msk [vmem:[#allocation2 + $0x8] sm:$0xff] %vm1621_vm15, %v1576_v36  ;;  %v860_v5 = vpop.permute.xlu1 %859  ;;  %v1252_v36 = vshll.u32 %v301_v11, 16 }
  0xc0   : > { %905 = vst.msk [vmem:[#allocation2 + $0x18] sm:$0xff] %vm901_vm8, %v860_v5  ;;  %1421 = vrot.lane.b32.xlu0 %v3363_v50, %s2882_s7 }
  0xc1   : > { %1423 = vrot.lane.b32.xlu1 %v3392_v20, %s2882_s7 }
  0xc2   : > { %v1102_v19 = vpop.permute.xlu0 %1101  ;;  %v1638_v15 = vld [vmem:[#allocation2] sm:$0xff] }
  0xc3   : > { %1148 = vst.msk [vmem:[#allocation2 + $0x10] sm:$0xff] %vm1145_vm9, %v1102_v19  ;;  %v1104_v37 = vpop.permute.xlu1 %1103  ;;  %2633 = vmatprep.mubr.msk.bf16.mxu0 %vm1681_vm0, %v1638_v15  ;;  %v3751_v19 = vld [vmem:[%s2982_s10 + $0xcc] sm:$0xf] }
  0xc4   : > { %1149 = vst.msk [vmem:[#allocation2 + $0x18] sm:$0xff] %vm1145_vm9, %v1104_v37  ;;  %1513 = vrot.lane.b32.xlu0 %v3417_v51, %s2883_s8  ;;  %v3755_v37 = vld [vmem:[%s2982_s10 + $0xd0] sm:$0xf]  ;;  %v2419_v58 = vrot.slane %v3751_v19, 9 }
  0xc5   : > { %1515 = vrot.lane.b32.xlu1 %v3444_v44, %s2883_s8 }
  0xc6   : > { %v1172_v50 = vpop.permute.xlu0 %1171  ;;  %v1639_v39 = vld [vmem:[#allocation2 + $0x8] sm:$0xff] }
  0xc7   : > { %1218 = vst.msk [vmem:[#allocation2 + $0x10] sm:$0xff] %vm1215_vm10, %v1172_v50  ;;  %v1174_v4 = vpop.permute.xlu1 %1173  ;;  %2634 = vmatmul.mubr.msk.bf16.vlgmr.msra.gmra.mrb[0].mxu0 %vm1681_vm0, %v1639_v39  ;;  %v1254_v39 = vrot.slane %v1252_v36, 5 }
  0xc8   : > { %1219 = vst.msk [vmem:[#allocation2 + $0x18] sm:$0xff] %vm1215_vm10, %v1174_v4  ;;  %1589 = vrot.lane.b32.xlu0 %v3413_v57, %s2884_s9  ;;  %v1471_v4 = vshrl.u32 %v3751_v19, 16 }
  0xc9   : > { %873 = vrot.lane.b32.xlu1 %v3417_v51, %s2879_s14 }
  0xca   : > { %v1264_v61 = vpop.permute.xlu0 %1263 }
  0xcb   : > { %1310 = vst.msk [vmem:[#allocation2 + $0x10] sm:$0xff] %vm1307_vm11, %v1264_v61  ;;  %v1266_v42 = vpop.permute.xlu1 %1265  ;;  %v1474_v61 = vshll.u32 %v3751_v19, 16 }
  0xcc   : > { %1311 = vst.msk [vmem:[#allocation2 + $0x18] sm:$0xff] %vm1307_vm11, %v1266_v42  ;;  %1591 = vrot.lane.b32.xlu0 %v3442_v56, %s2884_s9 }
  0xcd   : > { %875 = vrot.lane.b32.xlu1 %v3444_v44, %s2879_s14 }
  0xce   : > { %v1340_v59 = vpop.permute.xlu0 %1339 }
  0xcf   : > { %1386 = vst.msk [vmem:[#allocation2 + $0x10] sm:$0xff] %vm1383_vm12, %v1340_v59  ;;  %v1342_v2 = vpop.permute.xlu1 %1341  ;;  %v1327_v59 = vrot.slane %v3723_v48, 5 }
  0xd0   : > { %1387 = vst.msk [vmem:[#allocation2 + $0x18] sm:$0xff] %vm1383_vm12, %v1342_v2  ;;  %1117 = vrot.lane.b32.xlu0 %v3413_v57, %s2878_s13  ;;  %v1484_v2 = vshrl.u32 %v3755_v37, 16 }
  0xd1   : > { %1119 = vrot.lane.b32.xlu1 %v3442_v56, %s2878_s13 }
  0xd2   : > { %v1410_v51 = vpop.permute.xlu0 %1409 }
  0xd3   : > { %1456 = vst.msk [vmem:[#allocation2 + $0x10] sm:$0xff] %vm1453_vm13, %v1410_v51  ;;  %v1412_v47 = vpop.permute.xlu1 %1411  ;;  %v1480_v51 = vshll.u32 %v3755_v37, 16 }
  0xd4   : > { %1457 = vst.msk [vmem:[#allocation2 + $0x18] sm:$0xff] %vm1453_vm13, %v1412_v47  ;;  %1187 = vrot.lane.b32.xlu0 %v3392_v20, %s2877_s12 }
  0xd5   : > { %1189 = vrot.lane.b32.xlu1 %v3422_v12, %s2877_s12 }
  0xd6   : > { %v1502_v7 = vpop.permute.xlu0 %1501 }
  0xd7   : > { %1548 = vst.msk [vmem:[#allocation2 + $0x10] sm:$0xff] %vm1545_vm14, %v1502_v7  ;;  %v1504_v16 = vpop.permute.xlu1 %1503  ;;  %v2413_v7 = vcombine.low %v3720_v34, %v3723_v48  ;;  %v1565_v48 = vrot.slane %v3755_v37, 5 }
  0xd8   : > { %1549 = vst.msk [vmem:[#allocation2 + $0x18] sm:$0xff] %vm1545_vm14, %v1504_v16  ;;  %1279 = vrot.lane.b32.xlu0 %v3444_v44, %s2880_s21 }
  0xd9   : > { %1281 = vrot.lane.b32.xlu1 %v3465_v30, %s2880_s21  ;;  %v1566_v40 = vsel %vm3030_vm5, %v2419_v58, %v1565_v48 }
  0xda   : > { %v1578_v57 = vpop.permute.xlu0 %1577 }
  0xdb   : > { %1624 = vst.msk [vmem:[#allocation2 + $0x10] sm:$0xff] %vm1621_vm15, %v1578_v57  ;;  %v862_v3 = vpop.permute.xlu1 %861 }
  0xdc   : > { %906 = vst.msk [vmem:[#allocation2 + $0x20] sm:$0xff] %vm901_vm8, %v862_v3  ;;  %1355 = vrot.lane.b32.xlu0 %v3442_v56, %s2881_s27  ;;  %v2415_v3 = vrot.slane %v3720_v34, 9 }
  0xdd   : > { %1357 = vrot.lane.b32.xlu1 %v3467_v32, %s2881_s27 }
  0xde   : > { %v1580_v20 = vpop.permute.xlu0 %1579 }
  0xdf   : > { %1625 = vst.msk [vmem:[#allocation2 + $0x18] sm:$0xff] %vm1621_vm15, %v1580_v20  ;;  %v864_v26 = vpop.permute.xlu1 %863  ;;  %v1473_v20 = vrot.slane %v1471_v4, 4 }
  0xe0   : > { %907 = vst.msk [vmem:[#allocation2 + $0x28] sm:$0xff] %vm901_vm8, %v864_v26  ;;  %1425 = vrot.lane.b32.xlu0 %v3422_v12, %s2882_s7  ;;  %v1476_v26 = vrot.slane %v1474_v61, 5 }
  0xe1   : > { %1427 = vrot.lane.b32.xlu1 %v3447_v14, %s2882_s7 }
  0xe2   : > { %v1106_v44 = vpop.permute.xlu0 %1105  ;;  %v1640_v10 = vld [vmem:[#allocation2 + $0x10] sm:$0xff] }
  0xe3   : > { %1150 = vst.msk [vmem:[#allocation2 + $0x20] sm:$0xff] %vm1145_vm9, %v1106_v44  ;;  %v1108_v56 = vpop.permute.xlu1 %1107  ;;  %2637 = vmatprep.mubr.msk.bf16.mxu0 %vm1681_vm0, %v1640_v10  ;;  %v1329_v10 = vrot.slane %v1327_v59, 4 }
  0xe4   : > { %1151 = vst.msk [vmem:[#allocation2 + $0x28] sm:$0xff] %vm1145_vm9, %v1108_v56  ;;  %1517 = vrot.lane.b32.xlu0 %v3465_v30, %s2883_s8  ;;  %v1330_v56 = vrot.slane %v301_v11, 5 }
  0xe5   : > { %1519 = vrot.lane.b32.xlu1 %v3495_v35, %s2883_s8 }
  0xe6   : > { %v1176_v27 = vpop.permute.xlu0 %1175  ;;  %v1641_v12 = vld [vmem:[#allocation2 + $0x18] sm:$0xff] }
  0xe7   : > { %1220 = vst.msk [vmem:[#allocation2 + $0x20] sm:$0xff] %vm1215_vm10, %v1176_v27  ;;  %v1178_v21 = vpop.permute.xlu1 %1177  ;;  %2638 = vmatmul.mubr.msk.bf16.gmra.mrb[4].mxu0 %vm1681_vm0, %v1641_v12  ;;  %v1486_v27 = vrot.slane %v1484_v2, 4 }
  0xe8   : > { %1221 = vst.msk [vmem:[#allocation2 + $0x28] sm:$0xff] %vm1215_vm10, %v1178_v21  ;;  %1593 = vrot.lane.b32.xlu0 %v3467_v32, %s2884_s9  ;;  %v304_v21 = vld [vmem:[%s2982_s10 + $0xd4] sm:$0x1] }
  0xe9   : > { %877 = vrot.lane.b32.xlu1 %v3465_v30, %s2879_s14 }
  0xea   : > { %v1268_v22 = vpop.permute.xlu0 %1267 }
  0xeb   : > { %1312 = vst.msk [vmem:[#allocation2 + $0x20] sm:$0xff] %vm1307_vm11, %v1268_v22  ;;  %v1270_v49 = vpop.permute.xlu1 %1269 }
  0xec   : > { %1313 = vst.msk [vmem:[#allocation2 + $0x28] sm:$0xff] %vm1307_vm11, %v1270_v49  ;;  %1595 = vrot.lane.b32.xlu0 %v3491_v63, %s2884_s9  ;;  %v1477_v49 = vor.u32 %v1476_v26, %v1473_v20 }
  0xed   : > { %879 = vrot.lane.b32.xlu1 %v3495_v35, %s2879_s14 }
  0xee   : > { %v1344_v41 = vpop.permute.xlu0 %1343 }
  0xef   : > { %1388 = vst.msk [vmem:[#allocation2 + $0x20] sm:$0xff] %vm1383_vm12, %v1344_v41  ;;  %v1346_v46 = vpop.permute.xlu1 %1345 }
  0xf0   : > { %1389 = vst.msk [vmem:[#allocation2 + $0x28] sm:$0xff] %vm1383_vm12, %v1346_v46  ;;  %1121 = vrot.lane.b32.xlu0 %v3467_v32, %s2878_s13  ;;  %v1328_v46 = vsel %vm3030_vm5, %v2415_v3, %v1327_v59 }
  0xf1   : > { %1123 = vrot.lane.b32.xlu1 %v3491_v63, %s2878_s13 }
  0xf2   : > { %v1414_v30 = vpop.permute.xlu0 %1413 }
  0xf3   : > { %1458 = vst.msk [vmem:[#allocation2 + $0x20] sm:$0xff] %vm1453_vm13, %v1414_v30  ;;  %v1416_v52 = vpop.permute.xlu1 %1415  ;;  %v1331_v30 = vsel %vm3030_vm5, %v1329_v10, %v1330_v56 }
  0xf4   : > { %1459 = vst.msk [vmem:[#allocation2 + $0x28] sm:$0xff] %vm1453_vm13, %v1416_v52  ;;  %1191 = vrot.lane.b32.xlu0 %v3447_v14, %s2877_s12 }
  0xf5   : > { %1193 = vrot.lane.b32.xlu1 %v3474_v38, %s2877_s12 }
  0xf6   : > { %v1506_v43 = vpop.permute.xlu0 %1505 }
  0xf7   : > { %1550 = vst.msk [vmem:[#allocation2 + $0x20] sm:$0xff] %vm1545_vm14, %v1506_v43  ;;  %v1508_v32 = vpop.permute.xlu1 %1507  ;;  %v1490_v43 = vshll.u32 %v304_v21, 16 }
  0xf8   : > { %1551 = vst.msk [vmem:[#allocation2 + $0x28] sm:$0xff] %vm1545_vm14, %v1508_v32  ;;  %1283 = vrot.lane.b32.xlu0 %v3495_v35, %s2880_s21 }
  0xf9   : > { %1285 = vrot.lane.b32.xlu1 %v3518_v54, %s2880_s21 }
  0xfa   : > { %v1582_v45 = vpop.permute.xlu0 %1581 }
  0xfb   : > { %1626 = vst.msk [vmem:[#allocation2 + $0x20] sm:$0xff] %vm1621_vm15, %v1582_v45  ;;  %v866_v14 = vpop.permute.xlu1 %865  ;;  %v1478_v45 = vrot.slane %v1477_v49, 4 }
  0xfc   : > { %908 = vst.msk [vmem:[#allocation2 + $0x30] sm:$0xff] %vm901_vm8, %v866_v14  ;;  %1359 = vrot.lane.b32.xlu0 %v3491_v63, %s2881_s27  ;;  %v1236_v63 = vshll.u32 %v3720_v34, 16 }
  0xfd   : > { %1361 = vrot.lane.b32.xlu1 %v3520_v9, %s2881_s27 }
  0xfe   : > { %v1584_v55 = vpop.permute.xlu0 %1583  ;;  %v1238_v13 = vrot.slane %v1236_v63, 5 }
  0xff   : > { %1627 = vst.msk [vmem:[#allocation2 + $0x28] sm:$0xff] %vm1621_vm15, %v1584_v55  ;;  %v868_v35 = vpop.permute.xlu1 %867  ;;  %v1492_v55 = vrot.slane %v1490_v43, 5 }
 0x100   : > { %909 = vst.msk [vmem:[#allocation2 + $0x38] sm:$0xff] %vm901_vm8, %v868_v35  ;;  %1429 = vrot.lane.b32.xlu0 %v3474_v38, %s2882_s7  ;;  %v1235_v38 = vrot.slane %v1233_v25, 4 }
 0x101   : > { %1431 = vrot.lane.b32.xlu1 %v3497_v0, %s2882_s7 }
 0x102   : > { %v1110_v31 = vpop.permute.xlu0 %1109  ;;  %v1642_v29 = vld [vmem:[#allocation2 + $0x20] sm:$0xff]  ;;  %v1239_v33 = vor.u32 %v1238_v13, %v1235_v38 }
 0x103   : > { %1152 = vst.msk [vmem:[#allocation2 + $0x30] sm:$0xff] %vm1145_vm9, %v1110_v31  ;;  %v1112_v62 = vpop.permute.xlu1 %1111  ;;  %2641 = vmatprep.mubr.msk.bf16.mxu0 %vm1681_vm0, %v1642_v29  ;;  %v1567_v31 = vrot.slane %v1565_v48, 4  ;;  %v1568_v29 = vrot.slane %v304_v21, 5 }
 0x104   : > { %1153 = vst.msk [vmem:[#allocation2 + $0x38] sm:$0xff] %vm1145_vm9, %v1112_v62  ;;  %1521 = vrot.lane.b32.xlu0 %v3518_v54, %s2883_s8  ;;  %v1240_v50 = vrot.slane %v1239_v33, 4 }
 0x105   : > { %1523 = vrot.lane.b32.xlu1 %v3549_v18, %s2883_s8 }
 0x106   : > { %v1180_v23 = vpop.permute.xlu0 %1179  ;;  %v1643_v8 = vld [vmem:[#allocation2 + $0x28] sm:$0xff]  ;;  %v1245_v16 = vsel %vm3041_vm6, %v1240_v50, %v1244_v17  ;;  %v1569_v17 = vsel %vm3030_vm5, %v1567_v31, %v1568_v29 }
 0x107   : > { %1222 = vst.msk [vmem:[#allocation2 + $0x30] sm:$0xff] %vm1215_vm10, %v1180_v23  ;;  %v1182_v53 = vpop.permute.xlu1 %1181  ;;  %2642 = vmatmul.mubr.msk.bf16.gmra.mrb[8].mxu0 %vm1681_vm0, %v1643_v8  ;;  %v2420_v23 = vcombine.low %v1566_v40, %v1569_v17 }
 0x108   : > { %1223 = vst.msk [vmem:[#allocation2 + $0x38] sm:$0xff] %vm1215_vm10, %v1182_v53  ;;  %1597 = vrot.lane.b32.xlu0 %v3520_v9, %s2884_s9 }
 0x109   : > { %881 = vrot.lane.b32.xlu1 %v3518_v54, %s2879_s14  ;;  %v1250_v54 = vrot.slane %v1249_v60, 4 }
 0x10a   : > { %v1272_v5 = vpop.permute.xlu0 %1271 }
 0x10b   : > { %1314 = vst.msk [vmem:[#allocation2 + $0x30] sm:$0xff] %vm1307_vm11, %v1272_v5  ;;  %v1274_v15 = vpop.permute.xlu1 %1273  ;;  %v1255_v57 = vsel %vm3041_vm6, %v1250_v54, %v1254_v39 }
 0x10c   : > { %1315 = vst.msk [vmem:[#allocation2 + $0x38] sm:$0xff] %vm1307_vm11, %v1274_v15  ;;  %1599 = vrot.lane.b32.xlu0 %v3551_v24, %s2884_s9  ;;  %v2414_v22 = vcombine.low %v1245_v16, %v1255_v57 }
 0x10d   : > { %883 = vrot.lane.b32.xlu1 %v3549_v18, %s2879_s14 }
 0x10e   : > { %v1348_v42 = vpop.permute.xlu0 %1347 }
 0x10f   : > { %1390 = vst.msk [vmem:[#allocation2 + $0x30] sm:$0xff] %vm1383_vm12, %v1348_v42  ;;  %v1350_v47 = vpop.permute.xlu1 %1349 }
 0x110   : > { %1391 = vst.msk [vmem:[#allocation2 + $0x38] sm:$0xff] %vm1383_vm12, %v1350_v47  ;;  %1125 = vrot.lane.b32.xlu0 %v3520_v9, %s2878_s13  ;;  %v1482_v9 = vrot.slane %v1480_v51, 5 }
 0x111   : > { %1127 = vrot.lane.b32.xlu1 %v3551_v24, %s2878_s13  ;;  %s2512_s13 = sshll.u32 %s2866_s18, 11  ;;  %s3956_s18 = scalar_lea.sflag [#allocation4], %s228_s30 }
 0x112   : > { %v1418_v44 = vpop.permute.xlu0 %1417  ;;  %v1487_v52 = vor.u32 %v1486_v27, %v1482_v9  ;;  %v1483_v25 = vsel %vm3041_vm6, %v1478_v45, %v1482_v9  ;;  %s3948_s6 = scalar_lea.hbm %s4028_s3, %s2512_s13 }
 0x113   : > { %1460 = vst.msk [vmem:[#allocation2 + $0x30] sm:$0xff] %vm1453_vm13, %v1418_v44  ;;  %v1420_v12 = vpop.permute.xlu1 %1419 }
 0x114   : > { %1461 = vst.msk [vmem:[#allocation2 + $0x38] sm:$0xff] %vm1453_vm13, %v1420_v12  ;;  %1195 = vrot.lane.b32.xlu0 %v3497_v0, %s2877_s12  ;;  %v2416_v0 = vcombine.low %v1328_v46, %v1331_v30  ;;  %v1488_v34 = vrot.slane %v1487_v52, 4 }
 0x115   : > { %1197 = vrot.lane.b32.xlu1 %v2413_v7, %s2877_s12 }
 0x116   : > { %v1510_v41 = vpop.permute.xlu0 %1509  ;;  %v1493_v6 = vsel %vm3041_vm6, %v1488_v34, %v1492_v55 }
 0x117   : > { %1552 = vst.msk [vmem:[#allocation2 + $0x30] sm:$0xff] %vm1545_vm14, %v1510_v41  ;;  %v1512_v32 = vpop.permute.xlu1 %1511 }
 0x118   : > { %1553 = vst.msk [vmem:[#allocation2 + $0x38] sm:$0xff] %vm1545_vm14, %v1512_v32  ;;  %1287 = vrot.lane.b32.xlu0 %v3549_v18, %s2880_s21  ;;  %v2417_v18 = vcombine.low %v3751_v19, %v3755_v37 }
 0x119   : > { %1289 = vrot.lane.b32.xlu1 %v2414_v22, %s2880_s21  ;;  %s2214_s21 = sshll.u32 %s2984_s11, 4  ;;  %s3950_s21 = int_to_ptr.vmem [resolvable:$true] %s2214_s21 }
 0x11a   : > { %v1586_v14 = vpop.permute.xlu0 %1585 }
 0x11b   : > { %1628 = vst.msk [vmem:[#allocation2 + $0x30] sm:$0xff] %vm1621_vm15, %v1586_v14  ;;  %v870_v35 = vpop.permute.xlu1 %869 }
 0x11c   : > { %910 = vst.msk [vmem:[#allocation2 + $0x40] sm:$0xff] %vm901_vm8, %v870_v35  ;;  %1363 = vrot.lane.b32.xlu0 %v3551_v24, %s2881_s27  ;;  %v2418_v24 = vcombine.low %v1483_v25, %v1493_v6 }
 0x11d   : > { %1365 = vrot.lane.b32.xlu1 %v2416_v0, %s2881_s27 }
 0x11e   : > { %v1588_v63 = vpop.permute.xlu0 %1587 }
 0x11f   : > { %1629 = vst.msk [vmem:[#allocation2 + $0x38] sm:$0xff] %vm1621_vm15, %v1588_v63  ;;  %v872_v62 = vpop.permute.xlu1 %871 }
 0x120   : > { %911 = vst.msk [vmem:[#allocation2 + $0x48] sm:$0xff] %vm901_vm8, %v872_v62  ;;  %1433 = vrot.lane.b32.xlu0 %v2413_v7, %s2882_s7 }
 0x121   : > { %1435 = vrot.lane.b32.xlu1 %v2417_v18, %s2882_s7  ;;  %s2766_s7 = scalar_lea.vmem %s3950_s21, 2048 }
 0x122   : > { %v1114_v38 = vpop.permute.xlu0 %1113  ;;  %v1644_v13 = vld [vmem:[#allocation2 + $0x30] sm:$0xff]  ;;  %p2767_p13 = scmp.ne.s32.totalorder %s3950_s21, %s2766_s7 }
 0x123   : > { %1154 = vst.msk [vmem:[#allocation2 + $0x40] sm:$0xff] %vm1145_vm9, %v1114_v38  ;;  %v1116_v1 = vpop.permute.xlu1 %1115  ;;  %2645 = vmatprep.mubr.msk.bf16.mxu0 %vm1681_vm0, %v1644_v13 }
 0x124   : > { %1155 = vst.msk [vmem:[#allocation2 + $0x48] sm:$0xff] %vm1145_vm9, %v1116_v1  ;;  %1525 = vrot.lane.b32.xlu0 %v2414_v22, %s2883_s8  ;;  %p2768_p0 = pnand %p2767_p13, %p2959_p4 }
 0x125   : > { %1527 = vrot.lane.b32.xlu1 %v2418_v24, %s2883_s8  ;;  %s2885_s8 = smov [#allocation3]  }
 0x126   : > { %v1184_v8 = vpop.permute.xlu0 %1183  ;;  %v1645_v11 = vld [vmem:[#allocation2 + $0x38] sm:$0xff]  ;;  %p2769_p1 = pneg %p2768_p0 }
 0x127   : > { %1224 = vst.msk [vmem:[#allocation2 + $0x40] sm:$0xff] %vm1215_vm10, %v1184_v8  ;;  %v1186_v53 = vpop.permute.xlu1 %1185  ;;  %2646 = vmatmul.mubr.msk.bf16.gmra.mrb[12].mxu0 %vm1681_vm0, %v1645_v11 }
 0x128   : > { %1225 = vst.msk [vmem:[#allocation2 + $0x48] sm:$0xff] %vm1215_vm10, %v1186_v53  ;;  %1601 = vrot.lane.b32.xlu0 %v2416_v0, %s2884_s9 }
 0x129   : > { %1603 = vrot.lane.b32.xlu1 %v2420_v23, %s2884_s9  ;;  %s2770_s9 = sshll.u32 %s2885_s8, 4  ;;  %s2771_s9 = int_to_ptr.vmem [resolvable:$false] %s2770_s9 }
 0x12a   : > { %v1276_v28 = vpop.permute.xlu0 %1275  ;;  %s2772_s22 = scalar_lea.vmem %s2771_s9, 4096  ;;  %p2773_p3 = scmp.lt.s32.totalorder %s3950_s21, %s2771_s9 }
 0x12b   : > { %1316 = vst.msk [vmem:[#allocation2 + $0x40] sm:$0xff] %vm1307_vm11, %v1276_v28  ;;  %v1278_v33 = vpop.permute.xlu1 %1277  ;;  %v3891_v28 = vld [vmem:[%s4027_s2] ss:$0 sm:$0xff]  ;;  %p2774_p5 = scmp.lt.s32.totalorder %s2772_s22, %s2766_s7 }
 0x12c   : > { %1317 = vst.msk [vmem:[#allocation2 + $0x48] sm:$0xff] %vm1307_vm11, %v1278_v33 }
 0x12d   : > { %p2775_p6 = por %p2774_p5, %p2773_p3 }
 0x12e   : > { %v1352_v60 = vpop.permute.xlu0 %1351 }
 0x12f   : > { %1392 = vst.msk [vmem:[#allocation2 + $0x40] sm:$0xff] %vm1383_vm12, %v1352_v60  ;;  %v1354_v36 = vpop.permute.xlu1 %1353  ;;  %p2776_p7 = pnand %p2775_p6, %p2769_p1 }
 0x130   : > { %1393 = vst.msk [vmem:[#allocation2 + $0x48] sm:$0xff] %vm1383_vm12, %v1354_v36 }
 0x132   : > { %v1422_v5 = vpop.permute.xlu0 %1421 }
 0x133   : > { %1462 = vst.msk [vmem:[#allocation2 + $0x40] sm:$0xff] %vm1453_vm13, %v1422_v5  ;;  %v1424_v19 = vpop.permute.xlu1 %1423 }
 0x134   : > { %1463 = vst.msk [vmem:[#allocation2 + $0x48] sm:$0xff] %vm1453_vm13, %v1424_v19 }
 0x136   : > { %v1514_v15 = vpop.permute.xlu0 %1513 }
 0x137   : > { %1554 = vst.msk [vmem:[#allocation2 + $0x40] sm:$0xff] %vm1545_vm14, %v1514_v15  ;;  %v1516_v37 = vpop.permute.xlu1 %1515 }
 0x138   : > { %1555 = vst.msk [vmem:[#allocation2 + $0x48] sm:$0xff] %vm1545_vm14, %v1516_v37 }
 0x13a   : > { %v1590_v50 = vpop.permute.xlu0 %1589 }
 0x13b   : > { %1630 = vst.msk [vmem:[#allocation2 + $0x40] sm:$0xff] %vm1621_vm15, %v1590_v50  ;;  %v874_v54 = vpop.permute.xlu1 %873 }
 0x13c   : > { %912 = vst.msk [vmem:[#allocation2 + $0x50] sm:$0xff] %vm901_vm8, %v874_v54 }
 0x13e   : > { %v1592_v39 = vpop.permute.xlu0 %1591 }
 0x13f   : > { %1631 = vst.msk [vmem:[#allocation2 + $0x48] sm:$0xff] %vm1621_vm15, %v1592_v39  ;;  %v876_v4 = vpop.permute.xlu1 %875 }
 0x140   : > { %913 = vst.msk [vmem:[#allocation2 + $0x58] sm:$0xff] %vm901_vm8, %v876_v4 }
 0x142   : > { %v1118_v61 = vpop.permute.xlu0 %1117  ;;  %v1646_v42 = vld [vmem:[#allocation2 + $0x40] sm:$0xff] }
 0x143   : > { %1156 = vst.msk [vmem:[#allocation2 + $0x50] sm:$0xff] %vm1145_vm9, %v1118_v61  ;;  %v1120_v59 = vpop.permute.xlu1 %1119  ;;  %2649 = vmatprep.mubr.msk.bf16.mxu1 %vm1681_vm0, %v1646_v42 }
 0x144   : > { %1157 = vst.msk [vmem:[#allocation2 + $0x58] sm:$0xff] %vm1145_vm9, %v1120_v59 }
 0x146   : > { %v1188_v2 = vpop.permute.xlu0 %1187  ;;  %v1647_v51 = vld [vmem:[#allocation2 + $0x48] sm:$0xff] }
 0x147   : > { %1226 = vst.msk [vmem:[#allocation2 + $0x50] sm:$0xff] %vm1215_vm10, %v1188_v2  ;;  %v1190_v47 = vpop.permute.xlu1 %1189  ;;  %2650 = vmatmul.mubr.msk.bf16.vlgmr.msra.gmra.mrb[0].mxu1 %vm1681_vm0, %v1647_v51 }
 0x148   : > { %1227 = vst.msk [vmem:[#allocation2 + $0x58] sm:$0xff] %vm1215_vm10, %v1190_v47 }
 0x14a   : > { %v1280_v7 = vpop.permute.xlu0 %1279 }
 0x14b   : > { %1318 = vst.msk [vmem:[#allocation2 + $0x50] sm:$0xff] %vm1307_vm11, %v1280_v7  ;;  %v1282_v16 = vpop.permute.xlu1 %1281 }
 0x14c   : > { %1319 = vst.msk [vmem:[#allocation2 + $0x58] sm:$0xff] %vm1307_vm11, %v1282_v16 }
 0x14e   : > { %v1356_v57 = vpop.permute.xlu0 %1355 }
 0x14f   : > { %1394 = vst.msk [vmem:[#allocation2 + $0x50] sm:$0xff] %vm1383_vm12, %v1356_v57  ;;  %v1358_v3 = vpop.permute.xlu1 %1357 }
 0x150   : > { %1395 = vst.msk [vmem:[#allocation2 + $0x58] sm:$0xff] %vm1383_vm12, %v1358_v3 }
 0x152   : > { %v1426_v20 = vpop.permute.xlu0 %1425 }
 0x153   : > { %1464 = vst.msk [vmem:[#allocation2 + $0x50] sm:$0xff] %vm1453_vm13, %v1426_v20  ;;  %v1428_v26 = vpop.permute.xlu1 %1427 }
 0x154   : > { %1465 = vst.msk [vmem:[#allocation2 + $0x58] sm:$0xff] %vm1453_vm13, %v1428_v26 }
 0x156   : > { %v1518_v44 = vpop.permute.xlu0 %1517 }
 0x157   : > { %1556 = vst.msk [vmem:[#allocation2 + $0x50] sm:$0xff] %vm1545_vm14, %v1518_v44  ;;  %v1520_v10 = vpop.permute.xlu1 %1519 }
 0x158   : > { %1557 = vst.msk [vmem:[#allocation2 + $0x58] sm:$0xff] %vm1545_vm14, %v1520_v10 }
 0x15a   : > { %v1594_v56 = vpop.permute.xlu0 %1593 }
 0x15b   : > { %1632 = vst.msk [vmem:[#allocation2 + $0x50] sm:$0xff] %vm1621_vm15, %v1594_v56  ;;  %v878_v9 = vpop.permute.xlu1 %877 }
 0x15c   : > { %914 = vst.msk [vmem:[#allocation2 + $0x60] sm:$0xff] %vm901_vm8, %v878_v9 }
 0x15e   : > { %v1596_v27 = vpop.permute.xlu0 %1595 }
 0x15f   : > { %1633 = vst.msk [vmem:[#allocation2 + $0x58] sm:$0xff] %vm1621_vm15, %v1596_v27  ;;  %v880_v12 = vpop.permute.xlu1 %879 }
 0x160   : > { %915 = vst.msk [vmem:[#allocation2 + $0x68] sm:$0xff] %vm901_vm8, %v880_v12 }
 0x162   : > { %v1122_v21 = vpop.permute.xlu0 %1121  ;;  %v1648_v22 = vld [vmem:[#allocation2 + $0x50] sm:$0xff] }
 0x163   : > { %1158 = vst.msk [vmem:[#allocation2 + $0x60] sm:$0xff] %vm1145_vm9, %v1122_v21  ;;  %v1124_v49 = vpop.permute.xlu1 %1123  ;;  %2653 = vmatprep.mubr.msk.bf16.mxu1 %vm1681_vm0, %v1648_v22 }
 0x164   : > { %1159 = vst.msk [vmem:[#allocation2 + $0x68] sm:$0xff] %vm1145_vm9, %v1124_v49 }
 0x166   : > { %v1192_v41 = vpop.permute.xlu0 %1191  ;;  %v1649_v46 = vld [vmem:[#allocation2 + $0x58] sm:$0xff] }
 0x167   : > { %1228 = vst.msk [vmem:[#allocation2 + $0x60] sm:$0xff] %vm1215_vm10, %v1192_v41  ;;  %v1194_v30 = vpop.permute.xlu1 %1193  ;;  %2654 = vmatmul.mubr.msk.bf16.gmra.mrb[4].mxu1 %vm1681_vm0, %v1649_v46 }
 0x168   : > { %1229 = vst.msk [vmem:[#allocation2 + $0x68] sm:$0xff] %vm1215_vm10, %v1194_v30 }
 0x16a   : > { %v1284_v52 = vpop.permute.xlu0 %1283 }
 0x16b   : > { %1320 = vst.msk [vmem:[#allocation2 + $0x60] sm:$0xff] %vm1307_vm11, %v1284_v52  ;;  %v1286_v43 = vpop.permute.xlu1 %1285 }
 0x16c   : > { %1321 = vst.msk [vmem:[#allocation2 + $0x68] sm:$0xff] %vm1307_vm11, %v1286_v43 }
 0x16e   : > { %v1360_v32 = vpop.permute.xlu0 %1359 }
 0x16f   : > { %1396 = vst.msk [vmem:[#allocation2 + $0x60] sm:$0xff] %vm1383_vm12, %v1360_v32  ;;  %v1362_v0 = vpop.permute.xlu1 %1361 }
 0x170   : > { %1397 = vst.msk [vmem:[#allocation2 + $0x68] sm:$0xff] %vm1383_vm12, %v1362_v0 }
 0x172   : > { %v1430_v45 = vpop.permute.xlu0 %1429 }
 0x173   : > { %1466 = vst.msk [vmem:[#allocation2 + $0x60] sm:$0xff] %vm1453_vm13, %v1430_v45  ;;  %v1432_v14 = vpop.permute.xlu1 %1431 }
 0x174   : > { %1467 = vst.msk [vmem:[#allocation2 + $0x68] sm:$0xff] %vm1453_vm13, %v1432_v14 }
 0x176   : > { %v1522_v34 = vpop.permute.xlu0 %1521 }
 0x177   : > { %1558 = vst.msk [vmem:[#allocation2 + $0x60] sm:$0xff] %vm1545_vm14, %v1522_v34  ;;  %v1524_v55 = vpop.permute.xlu1 %1523 }
 0x178   : > { %1559 = vst.msk [vmem:[#allocation2 + $0x68] sm:$0xff] %vm1545_vm14, %v1524_v55 }
 0x17a   : > { %v1598_v48 = vpop.permute.xlu0 %1597 }
 0x17b   : > { %1634 = vst.msk [vmem:[#allocation2 + $0x60] sm:$0xff] %vm1621_vm15, %v1598_v48  ;;  %v882_v35 = vpop.permute.xlu1 %881 }
 0x17c   : > { %916 = vst.msk [vmem:[#allocation2 + $0x70] sm:$0xff] %vm901_vm8, %v882_v35 }
 0x17e   : > { %v1600_v18 = vpop.permute.xlu0 %1599 }
 0x17f   : > { %1635 = vst.msk [vmem:[#allocation2 + $0x68] sm:$0xff] %vm1621_vm15, %v1600_v18  ;;  %v884_v25 = vpop.permute.xlu1 %883 }
 0x180   : > { %917 = vst.msk [vmem:[#allocation2 + $0x78] sm:$0xff] %vm901_vm8, %v884_v25 }
 0x182   : > { %v1126_v63 = vpop.permute.xlu0 %1125  ;;  %v1650_v6 = vld [vmem:[#allocation2 + $0x60] sm:$0xff] }
 0x183   : > { %1160 = vst.msk [vmem:[#allocation2 + $0x70] sm:$0xff] %vm1145_vm9, %v1126_v63  ;;  %v1128_v58 = vpop.permute.xlu1 %1127  ;;  %2657 = vmatprep.mubr.msk.bf16.mxu1 %vm1681_vm0, %v1650_v6 }
 0x184   : > { %1161 = vst.msk [vmem:[#allocation2 + $0x78] sm:$0xff] %vm1145_vm9, %v1128_v58 }
 0x186   : > { %v1196_v31 = vpop.permute.xlu0 %1195  ;;  %v1651_v29 = vld [vmem:[#allocation2 + $0x68] sm:$0xff] }
 0x187   : > { %1230 = vst.msk [vmem:[#allocation2 + $0x70] sm:$0xff] %vm1215_vm10, %v1196_v31  ;;  %v1198_v62 = vpop.permute.xlu1 %1197  ;;  %2658 = vmatmul.mubr.msk.bf16.gmra.mrb[8].mxu1 %vm1681_vm0, %v1651_v29 }
 0x188   : > { %1231 = vst.msk [vmem:[#allocation2 + $0x78] sm:$0xff] %vm1215_vm10, %v1198_v62 }
 0x18a   : > { %v1288_v24 = vpop.permute.xlu0 %1287 }
 0x18b   : > { %1322 = vst.msk [vmem:[#allocation2 + $0x70] sm:$0xff] %vm1307_vm11, %v1288_v24  ;;  %v1290_v38 = vpop.permute.xlu1 %1289 }
 0x18c   : > { %1323 = vst.msk [vmem:[#allocation2 + $0x78] sm:$0xff] %vm1307_vm11, %v1290_v38 }
 0x18e   : > { %v1364_v13 = vpop.permute.xlu0 %1363 }
 0x18f   : > { %1398 = vst.msk [vmem:[#allocation2 + $0x70] sm:$0xff] %vm1383_vm12, %v1364_v13  ;;  %v1366_v40 = vpop.permute.xlu1 %1365 }
 0x190   : > { %1399 = vst.msk [vmem:[#allocation2 + $0x78] sm:$0xff] %vm1383_vm12, %v1366_v40 }
 0x192   : > { %v1434_v17 = vpop.permute.xlu0 %1433 }
 0x193   : > { %1468 = vst.msk [vmem:[#allocation2 + $0x70] sm:$0xff] %vm1453_vm13, %v1434_v17  ;;  %v1436_v1 = vpop.permute.xlu1 %1435 }
 0x194   : > { %1469 = vst.msk [vmem:[#allocation2 + $0x78] sm:$0xff] %vm1453_vm13, %v1436_v1 }
 0x196   : > { %v1526_v23 = vpop.permute.xlu0 %1525 }
 0x197   : > { %1560 = vst.msk [vmem:[#allocation2 + $0x70] sm:$0xff] %vm1545_vm14, %v1526_v23  ;;  %v1528_v8 = vpop.permute.xlu1 %1527 }
 0x198   : > { %1561 = vst.msk [vmem:[#allocation2 + $0x78] sm:$0xff] %vm1545_vm14, %v1528_v8 }
 0x19a   : > { %v1602_v11 = vpop.permute.xlu0 %1601  ;;  %v2635_v53 = vpop.f32.mrb[0].mxu0 }
 0x19b   : > { %1636 = vst.msk [vmem:[#allocation2 + $0x70] sm:$0xff] %vm1621_vm15, %v1602_v11  ;;  %v1604_v33 = vpop.permute.xlu1 %1603  ;;  %v1768_v60 = vpop.f32.mrb[1].mxu0  ;;  %v1777_v5 = vadd.f32 %v2635_v53, %v3891_v28 }
 0x19c   : > { %1637 = vst.msk [vmem:[#allocation2 + $0x78] sm:$0xff] %vm1621_vm15, %v1604_v33  ;;  %v2636_v36 = vpop.f32.mrb[2].mxu0  ;;  %v1769_v37 = vadd.f32 %v3891_v28, %v1768_v60 }
 0x19d   : > { %v1780_v19 = vadd.f32 %v2636_v36, %v3891_v28  ;;  %v1771_v15 = vpop.f32.mrb[3].mxu0 }
 0x19e   : > { %v1772_v50 = vadd.f32 %v3891_v28, %v1771_v15 }
 0x19f   : > { %v1896_v54 = vpack.c.bf16 %v1780_v19, %v1777_v5 }
 0x1a0   : > { %v1895_v39 = vpack.c.bf16 %v1772_v50, %v1769_v37 }
 0x1a1   : > { %2593 = vst [vmem:[%s2984_s11 + $0x8] sm:$0xff] %v1896_v54   ;;  %v2057_v4 = vunpack.c.l.bf16 %v1896_v54  ;;  %v2058_v51 = vunpack.c.h.bf16 %v1896_v54 }
 0x1a2   : > { %2517 = vst [vmem:[%s2984_s11] sm:$0xff] %v1895_v39   ;;  %v2055_v61 = vunpack.c.l.bf16 %v1895_v39  ;;  %v2056_v42 = vunpack.c.h.bf16 %v1895_v39  ;;  %v1652_v59 = vld [vmem:[#allocation2 + $0x70] sm:$0xff] }
 0x1a3   : > { %2661 = vmatprep.mubr.msk.bf16.mxu1 %vm1681_vm0, %v1652_v59  ;;  %v1653_v2 = vld [vmem:[#allocation2 + $0x78] sm:$0xff]  ;;  %v2130_v57 = vmul.f32 %v2057_v4, %v2057_v4  ;;  %v2131_v26 = vmul.f32 %v2058_v51, %v2058_v51 }
 0x1a4   : > { %v2088_v47 = vadd.f32 %v2056_v42, %v2055_v61  ;;  %v2128_v7 = vmul.f32 %v2055_v61, %v2055_v61  ;;  %v2129_v16 = vmul.f32 %v2056_v42, %v2056_v42  ;;  %2662 = vmatmul.mubr.msk.bf16.gmra.mrb[12].mxu1 %vm1681_vm0, %v1653_v2 }
 0x1a6   : > { %v2089_v3 = vadd.f32 %v2088_v47, %v2057_v4  ;;  %v2160_v20 = vadd.f32 %v2129_v16, %v2128_v7 }
 0x1a8   : > { %v2161_v44 = vadd.f32 %v2160_v20, %v2130_v57  ;;  %v2090_v10 = vadd.f32 %v2089_v3, %v2058_v51 }
 0x1aa   : > { %v2162_v56 = vadd.f32 %v2161_v44, %v2131_v26 }
 0x1ba   : > { %v2639_v9 = vpop.f32.mrb[4].mxu0 }
 0x1bb   : > { %v1784_v27 = vpop.f32.mrb[5].mxu0  ;;  %v1793_v21 = vadd.f32 %v2639_v9, %v3891_v28 }
 0x1bc   : > { %v2640_v12 = vpop.f32.mrb[6].mxu0  ;;  %v1785_v41 = vadd.f32 %v3891_v28, %v1784_v27 }
 0x1bd   : > { %v1796_v22 = vadd.f32 %v2640_v12, %v3891_v28  ;;  %v1787_v49 = vpop.f32.mrb[7].mxu0 }
 0x1be   : > { %v1788_v46 = vadd.f32 %v3891_v28, %v1787_v49 }
 0x1bf   : > { %v1898_v30 = vpack.c.bf16 %v1796_v22, %v1793_v21 }
 0x1c0   : > { %v1897_v52 = vpack.c.bf16 %v1788_v46, %v1785_v41 }
 0x1c1   : > { %2595 = vst [vmem:[%s2984_s11 + $0x18] sm:$0xff] %v1898_v30   ;;  %v2061_v0 = vunpack.c.l.bf16 %v1898_v30  ;;  %v2062_v34 = vunpack.c.h.bf16 %v1898_v30 }
 0x1c2   : > { %2594 = vst [vmem:[%s2984_s11 + $0x10] sm:$0xff] %v1897_v52   ;;  %v2059_v43 = vunpack.c.l.bf16 %v1897_v52  ;;  %v2060_v32 = vunpack.c.h.bf16 %v1897_v52 }
 0x1c3   : > { %v2134_v18 = vmul.f32 %v2061_v0, %v2061_v0  ;;  %v2135_v6 = vmul.f32 %v2062_v34, %v2062_v34 }
 0x1c4   : > { %v2091_v45 = vadd.f32 %v2090_v10, %v2059_v43  ;;  %v2132_v14 = vmul.f32 %v2059_v43, %v2059_v43  ;;  %v2133_v48 = vmul.f32 %v2060_v32, %v2060_v32 }
 0x1c6   : > { %v2092_v55 = vadd.f32 %v2091_v45, %v2060_v32  ;;  %v2163_v35 = vadd.f32 %v2162_v56, %v2132_v14 }
 0x1c8   : > { %v2093_v25 = vadd.f32 %v2092_v55, %v2061_v0  ;;  %v2164_v63 = vadd.f32 %v2163_v35, %v2133_v48 }
 0x1ca   : > { %v2165_v58 = vadd.f32 %v2164_v63, %v2134_v18  ;;  %v2094_v31 = vadd.f32 %v2093_v25, %v2062_v34 }
 0x1cc   : > { %v2166_v29 = vadd.f32 %v2165_v58, %v2135_v6 }
 0x1da   : > { %v2643_v62 = vpop.f32.mrb[8].mxu0 }
 0x1db   : > { %v1800_v24 = vpop.f32.mrb[9].mxu0  ;;  %v1809_v13 = vadd.f32 %v2643_v62, %v3891_v28 }
 0x1dc   : > { %v2644_v38 = vpop.f32.mrb[10].mxu0  ;;  %v1801_v1 = vadd.f32 %v3891_v28, %v1800_v24 }
 0x1dd   : > { %v1812_v40 = vadd.f32 %v2644_v38, %v3891_v28  ;;  %v1803_v17 = vpop.f32.mrb[11].mxu0 }
 0x1de   : > { %v1804_v23 = vadd.f32 %v3891_v28, %v1803_v17 }
 0x1df   : > { %v1900_v8 = vpack.c.bf16 %v1812_v40, %v1809_v13 }
 0x1e0   : > { %v1899_v11 = vpack.c.bf16 %v1804_v23, %v1801_v1 }
 0x1e1   : > { %2597 = vst [vmem:[%s2984_s11 + $0x28] sm:$0xff] %v1900_v8   ;;  %v2065_v60 = vunpack.c.l.bf16 %v1900_v8  ;;  %v2066_v19 = vunpack.c.h.bf16 %v1900_v8 }
 0x1e2   : > { %2596 = vst [vmem:[%s2984_s11 + $0x20] sm:$0xff] %v1899_v11   ;;  %v2063_v53 = vunpack.c.l.bf16 %v1899_v11  ;;  %v2064_v33 = vunpack.c.h.bf16 %v1899_v11 }
 0x1e3   : > { %v2138_v54 = vmul.f32 %v2065_v60, %v2065_v60  ;;  %v2139_v61 = vmul.f32 %v2066_v19, %v2066_v19 }
 0x1e4   : > { %v2095_v36 = vadd.f32 %v2094_v31, %v2063_v53  ;;  %v2136_v5 = vmul.f32 %v2063_v53, %v2063_v53  ;;  %v2137_v37 = vmul.f32 %v2064_v33, %v2064_v33 }
 0x1e6   : > { %v2096_v15 = vadd.f32 %v2095_v36, %v2064_v33  ;;  %v2167_v50 = vadd.f32 %v2166_v29, %v2136_v5 }
 0x1e8   : > { %v2097_v39 = vadd.f32 %v2096_v15, %v2065_v60  ;;  %v2168_v4 = vadd.f32 %v2167_v50, %v2137_v37 }
 0x1ea   : > { %v2169_v42 = vadd.f32 %v2168_v4, %v2138_v54  ;;  %v2098_v59 = vadd.f32 %v2097_v39, %v2066_v19 }
 0x1ec   : > { %v2170_v2 = vadd.f32 %v2169_v42, %v2139_v61 }
 0x1fa   : > { %v2647_v51 = vpop.f32.mrb[12].mxu0 }
 0x1fb   : > { %v1816_v47 = vpop.f32.mrb[13].mxu0  ;;  %v1825_v16 = vadd.f32 %v2647_v51, %v3891_v28 }
 0x1fc   : > { %v2648_v7 = vpop.f32.mrb[14].mxu0  ;;  %v1817_v20 = vadd.f32 %v3891_v28, %v1816_v47 }
 0x1fd   : > { %v1828_v57 = vadd.f32 %v2648_v7, %v3891_v28  ;;  %v1819_v3 = vpop.f32.mrb[15].mxu0 }
 0x1fe   : > { %v1820_v26 = vadd.f32 %v3891_v28, %v1819_v3 }
 0x1ff   : > { %v1902_v44 = vpack.c.bf16 %v1828_v57, %v1825_v16 }
 0x200   : > { %v1901_v10 = vpack.c.bf16 %v1820_v26, %v1817_v20 }
 0x201   : > { %2599 = vst [vmem:[%s2984_s11 + $0x38] sm:$0xff] %v1902_v44   ;;  %v2069_v27 = vunpack.c.l.bf16 %v1902_v44  ;;  %v2070_v22 = vunpack.c.h.bf16 %v1902_v44 }
 0x202   : > { %2598 = vst [vmem:[%s2984_s11 + $0x30] sm:$0xff] %v1901_v10   ;;  %v2067_v56 = vunpack.c.l.bf16 %v1901_v10  ;;  %v2068_v9 = vunpack.c.h.bf16 %v1901_v10 }
 0x203   : > { %v2142_v30 = vmul.f32 %v2069_v27, %v2069_v27  ;;  %v2143_v32 = vmul.f32 %v2070_v22, %v2070_v22 }
 0x204   : > { %v2099_v12 = vadd.f32 %v2098_v59, %v2067_v56  ;;  %v2140_v21 = vmul.f32 %v2067_v56, %v2067_v56  ;;  %v2141_v41 = vmul.f32 %v2068_v9, %v2068_v9 }
 0x206   : > { %v2100_v49 = vadd.f32 %v2099_v12, %v2068_v9  ;;  %v2171_v46 = vadd.f32 %v2170_v2, %v2140_v21 }
 0x208   : > { %v2101_v52 = vadd.f32 %v2100_v49, %v2069_v27  ;;  %v2172_v43 = vadd.f32 %v2171_v46, %v2141_v41 }
 0x20a   : > { %v2173_v0 = vadd.f32 %v2172_v43, %v2142_v30  ;;  %v2102_v45 = vadd.f32 %v2101_v52, %v2070_v22 }
 0x20c   : > { %v2174_v14 = vadd.f32 %v2173_v0, %v2143_v32 }
 0x21a   : > { %v2651_v34 = vpop.f32.mrb[0].mxu1 }
 0x21b   : > { %v1832_v55 = vpop.f32.mrb[1].mxu1  ;;  %v1841_v35 = vadd.f32 %v2651_v34, %v3891_v28 }
 0x21c   : > { %v2652_v48 = vpop.f32.mrb[2].mxu1  ;;  %v1833_v63 = vadd.f32 %v3891_v28, %v1832_v55 }
 0x21d   : > { %v1844_v18 = vadd.f32 %v2652_v48, %v3891_v28  ;;  %v1835_v25 = vpop.f32.mrb[3].mxu1 }
 0x21e   : > { %v1836_v6 = vadd.f32 %v3891_v28, %v1835_v25 }
 0x21f   : > { %v1904_v58 = vpack.c.bf16 %v1844_v18, %v1841_v35 }
 0x220   : > { %v1903_v31 = vpack.c.bf16 %v1836_v6, %v1833_v63 }
 0x221   : > { %2601 = vst [vmem:[%s2984_s11 + $0x48] sm:$0xff] %v1904_v58   ;;  %v2073_v24 = vunpack.c.l.bf16 %v1904_v58  ;;  %v2074_v40 = vunpack.c.h.bf16 %v1904_v58 }
 0x222   : > { %2600 = vst [vmem:[%s2984_s11 + $0x40] sm:$0xff] %v1903_v31   ;;  %v2071_v29 = vunpack.c.l.bf16 %v1903_v31  ;;  %v2072_v62 = vunpack.c.h.bf16 %v1903_v31 }
 0x223   : > { %v2146_v8 = vmul.f32 %v2073_v24, %v2073_v24  ;;  %v2147_v33 = vmul.f32 %v2074_v40, %v2074_v40 }
 0x224   : > { %v2103_v38 = vadd.f32 %v2102_v45, %v2071_v29  ;;  %v2144_v13 = vmul.f32 %v2071_v29, %v2071_v29  ;;  %v2145_v1 = vmul.f32 %v2072_v62, %v2072_v62 }
 0x226   : > { %v2104_v17 = vadd.f32 %v2103_v38, %v2072_v62  ;;  %v2175_v23 = vadd.f32 %v2174_v14, %v2144_v13 }
 0x228   : > { %v2105_v11 = vadd.f32 %v2104_v17, %v2073_v24  ;;  %v2176_v53 = vadd.f32 %v2175_v23, %v2145_v1 }
 0x22a   : > { %v2177_v60 = vadd.f32 %v2176_v53, %v2146_v8  ;;  %v2106_v36 = vadd.f32 %v2105_v11, %v2074_v40 }
 0x22c   : > { %v2178_v5 = vadd.f32 %v2177_v60, %v2147_v33 }
 0x23a   : > { %v2655_v19 = vpop.f32.mrb[4].mxu1 }
 0x23b   : > { %v1848_v15 = vpop.f32.mrb[5].mxu1  ;;  %v1857_v50 = vadd.f32 %v2655_v19, %v3891_v28 }
 0x23c   : > { %v2656_v37 = vpop.f32.mrb[6].mxu1  ;;  %v1849_v4 = vadd.f32 %v3891_v28, %v1848_v15 }
 0x23d   : > { %v1860_v54 = vadd.f32 %v2656_v37, %v3891_v28  ;;  %v1851_v39 = vpop.f32.mrb[7].mxu1 }
 0x23e   : > { %v1852_v61 = vadd.f32 %v3891_v28, %v1851_v39 }
 0x23f   : > { %v1906_v42 = vpack.c.bf16 %v1860_v54, %v1857_v50 }
 0x240   : > { %v1905_v59 = vpack.c.bf16 %v1852_v61, %v1849_v4 }
 0x241   : > { %2603 = vst [vmem:[%s2984_s11 + $0x58] sm:$0xff] %v1906_v42   ;;  %v2077_v47 = vunpack.c.l.bf16 %v1906_v42  ;;  %v2078_v57 = vunpack.c.h.bf16 %v1906_v42 }
 0x242   : > { %2602 = vst [vmem:[%s2984_s11 + $0x50] sm:$0xff] %v1905_v59   ;;  %v2075_v2 = vunpack.c.l.bf16 %v1905_v59  ;;  %v2076_v51 = vunpack.c.h.bf16 %v1905_v59 }
 0x243   : > { %v2150_v44 = vmul.f32 %v2077_v47, %v2077_v47  ;;  %v2151_v9 = vmul.f32 %v2078_v57, %v2078_v57 }
 0x244   : > { %v2107_v7 = vadd.f32 %v2106_v36, %v2075_v2  ;;  %v2148_v16 = vmul.f32 %v2075_v2, %v2075_v2  ;;  %v2149_v20 = vmul.f32 %v2076_v51, %v2076_v51 }
 0x246   : > { %v2108_v3 = vadd.f32 %v2107_v7, %v2076_v51  ;;  %v2179_v26 = vadd.f32 %v2178_v5, %v2148_v16 }
 0x248   : > { %v2109_v10 = vadd.f32 %v2108_v3, %v2077_v47  ;;  %v2180_v56 = vadd.f32 %v2179_v26, %v2149_v20 }
 0x24a   : > { %v2181_v27 = vadd.f32 %v2180_v56, %v2150_v44  ;;  %v2110_v12 = vadd.f32 %v2109_v10, %v2078_v57 }
 0x24c   : > { %v2182_v21 = vadd.f32 %v2181_v27, %v2151_v9 }
 0x25a   : > { %v2659_v22 = vpop.f32.mrb[8].mxu1 }
 0x25b   : > { %v1864_v49 = vpop.f32.mrb[9].mxu1  ;;  %v1873_v46 = vadd.f32 %v2659_v22, %v3891_v28 }
 0x25c   : > { %v2660_v41 = vpop.f32.mrb[10].mxu1  ;;  %v1865_v43 = vadd.f32 %v3891_v28, %v1864_v49 }
 0x25d   : > { %v1876_v30 = vadd.f32 %v2660_v41, %v3891_v28  ;;  %v1867_v52 = vpop.f32.mrb[11].mxu1 }
 0x25e   : > { %v1868_v32 = vadd.f32 %v3891_v28, %v1867_v52 }
 0x25f   : > { %v1908_v0 = vpack.c.bf16 %v1876_v30, %v1873_v46 }
 0x260   : > { %v1907_v45 = vpack.c.bf16 %v1868_v32, %v1865_v43 }
 0x261   : > { %2605 = vst [vmem:[%s2984_s11 + $0x68] sm:$0xff] %v1908_v0   ;;  %v2081_v55 = vunpack.c.l.bf16 %v1908_v0  ;;  %v2082_v18 = vunpack.c.h.bf16 %v1908_v0 }
 0x262   : > { %2604 = vst [vmem:[%s2984_s11 + $0x60] sm:$0xff] %v1907_v45   ;;  %v2079_v14 = vunpack.c.l.bf16 %v1907_v45  ;;  %v2080_v34 = vunpack.c.h.bf16 %v1907_v45 }
 0x263   : > { %v2154_v58 = vmul.f32 %v2081_v55, %v2081_v55  ;;  %v2155_v62 = vmul.f32 %v2082_v18, %v2082_v18 }
 0x264   : > { %v2111_v48 = vadd.f32 %v2110_v12, %v2079_v14  ;;  %v2152_v35 = vmul.f32 %v2079_v14, %v2079_v14  ;;  %v2153_v63 = vmul.f32 %v2080_v34, %v2080_v34 }
 0x266   : > { %v2112_v25 = vadd.f32 %v2111_v48, %v2080_v34  ;;  %v2183_v6 = vadd.f32 %v2182_v21, %v2152_v35 }
 0x268   : > { %v2113_v31 = vadd.f32 %v2112_v25, %v2081_v55  ;;  %v2184_v29 = vadd.f32 %v2183_v6, %v2153_v63 }
 0x26a   : > { %v2185_v24 = vadd.f32 %v2184_v29, %v2154_v58  ;;  %v2114_v38 = vadd.f32 %v2113_v31, %v2082_v18 }
 0x26c   : > { %v2186_v13 = vadd.f32 %v2185_v24, %v2155_v62 }
 0x277   : > { %v2663_v40 = vpop.f32.mrb[12].mxu1 }
 0x278   : > { %v1880_v17 = vpop.f32.mrb[13].mxu1  ;;  %v1889_v23 = vadd.f32 %v2663_v40, %v3891_v28 }
 0x279   : > { %v2664_v1 = vpop.f32.mrb[14].mxu1  ;;  %v1881_v53 = vadd.f32 %v3891_v28, %v1880_v17 }
 0x27a   : > { %v1892_v8 = vadd.f32 %v2664_v1, %v3891_v28  ;;  %v1883_v11 = vpop.f32.mrb[15].mxu1 }
 0x27b   : > { %v1884_v33 = vadd.f32 %v3891_v28, %v1883_v11 }
 0x27c   : > { %v1910_v60 = vpack.c.bf16 %v1892_v8, %v1889_v23 }
 0x27d   : > { %v1909_v36 = vpack.c.bf16 %v1884_v33, %v1881_v53 }
 0x27e   : > { %2607 = vst [vmem:[%s2984_s11 + $0x78] sm:$0xff] %v1910_v60  }
 0x27f   : > { %2606 = vst [vmem:[%s2984_s11 + $0x70] sm:$0xff] %v1909_v36   ;;  %v2083_v5 = vunpack.c.l.bf16 %v1909_v36  ;;  %v2084_v19 = vunpack.c.h.bf16 %v1909_v36 }
 0x280   : > { %2779 = shalt.err (!%p2776_p7)
}
 0x281   : > { %s2780_s30 = scalar_lea.hbm %s3948_s6, 2048  ;;  %s2784_s10 = scalar_lea.hbm %s4028_s3, 4096 }
 0x282   : > { %p2781_p9 = scmp.ne.s32.totalorder %s3948_s6, %s2780_s30  ;;  %p2785_p12 = scmp.lt.u32.totalorder %s3948_s6, %s4028_s3 }
 0x283   : > { %p2786_p13 = scmp.lt.u32.totalorder %s2784_s10, %s2780_s30  ;;  %p2788_p1 = scmp.lt.u32.totalorder %s2780_s30, %s3948_s6 }
 0x284   : > { %p2782_p10 = pnand %p2781_p9, %p2959_p4 }
 0x285   : > { %p2787_p0 = por %p2786_p13, %p2785_p12 }
 0x286   : > { %p2783_p11 = pneg %p2782_p10 }
 0x287   : > { %p2789_p3 = por %p2788_p1, %p2787_p0 }
 0x289   : > { %p2790_p5 = pnand %p2789_p3, %p2783_p11 }
 0x28b   : > { %2793 = shalt.err (!%p2790_p5)
}
 0x28c   : > { %s2886_s27 = smov 64   ;;  %v2085_v28 = vunpack.c.l.bf16 %v1910_v60  ;;  %v2115_v15 = vadd.f32 %v2114_v38, %v2083_v5  ;;  %v2156_v37 = vmul.f32 %v2083_v5, %v2083_v5  ;;  %v2086_v50 = vunpack.c.h.bf16 %v1910_v60  ;;  %v2087_v27 = vld [vmem:[#allocation5] sm:$0x1]  ;;  %v2127_v22 = vld [vmem:[#allocation5 + $0x1] sm:$0x1]  ;;  %s2887_s26 = smov [#allocation5]  }
 0x28d   : > { %2674 = dma.vmem_to_hbm [thread:$0]  (%p2959_p4), %s3950_s21, 2048, %s3948_s6, %s3956_s18, %s2886_s27, %s2886_s27, %s2879_s14   ;;  %v2157_v39 = vmul.f32 %v2084_v19, %v2084_v19 }
 0x28e   : > { %v2116_v54 = vadd.f32 %v2115_v15, %v2084_v19  ;;  %v2187_v4 = vadd.f32 %v2186_v13, %v2156_v37  ;;  %v2158_v61 = vmul.f32 %v2085_v28, %v2085_v28  ;;  %v2159_v2 = vmul.f32 %v2086_v50, %v2086_v50  ;;  %s2230_s14 = sshll.u32 %s2887_s26, 4  ;;  %s2231_s14 = int_to_ptr.vmem [resolvable:$true] %s2230_s14 }
 0x28f   : > { %s2794_s21 = scalar_lea.vmem %s2231_s14, 32  ;;  %p2801_p9 = scmp.lt.s32.totalorder %s2231_s14, %s2231_s14 }
 0x290   : > { %v2117_v42 = vadd.f32 %v2116_v54, %v2085_v28  ;;  %v2188_v59 = vadd.f32 %v2187_v4, %v2157_v39  ;;  %p2795_p4 = scmp.ne.s32.totalorder %s2231_s14, %s2794_s21  ;;  %p2802_p10 = scmp.lt.s32.totalorder %s2794_s21, %s2794_s21 }
 0x292   : > { %v2189_v51 = vadd.f32 %v2188_v59, %v2158_v61  ;;  %v2118_v47 = vadd.f32 %v2117_v42, %v2086_v50  ;;  %p2796_p6 = pnand %p2795_p4, %p2949_p2  ;;  %p2803_p11 = por %p2802_p10, %p2801_p9 }
 0x294   : > { %v2119_v7 = vrot.slane %v2118_v47, 4  ;;  %v2190_v16 = vadd.f32 %v2189_v51, %v2159_v2  ;;  %p2797_p7 = pneg %p2796_p6 }
 0x296   : > { %v2120_v57 = vadd.f32 %v2119_v7, %v2118_v47  ;;  %v2191_v3 = vrot.slane %v2190_v16, 4  ;;  %p2804_p12 = pnand %p2803_p11, %p2797_p7 }
 0x298   : > { %v2121_v20 = vrot.slane %v2120_v57, 2  ;;  %v2192_v26 = vadd.f32 %v2191_v3, %v2190_v16 }
 0x29a   : > { %v2122_v44 = vadd.f32 %v2121_v20, %v2120_v57  ;;  %v2193_v10 = vrot.slane %v2192_v26, 2 }
 0x29c   : > { %v2123_v56 = vrot.slane %v2122_v44, 1  ;;  %v2194_v9 = vadd.f32 %v2193_v10, %v2192_v26 }
 0x29e   : > { %v2124_v12 = vadd.f32 %v2123_v56, %v2122_v44  ;;  %v2195_v21 = vrot.slane %v2194_v9, 1 }
 0x2a0   : > { %v2125_v49 = vadd.f32 %v2124_v12, %v2087_v27  ;;  %v2196_v41 = vadd.f32 %v2195_v21, %v2194_v9 }
 0x2a2   : > { %2126 = vst [vmem:[#allocation5] sm:$0x1] %v2125_v49  ;;  %v2197_v46 = vadd.f32 %v2196_v41, %v2127_v22 }
 0x2a4   : > { %2198 = vst [vmem:[#allocation5 + $0x1] sm:$0x1] %v2197_v46 }
 0x2a5   : > { %2807 = shalt.err (!%p2804_p12)
}
 0x2a6   : > { %s2808_s18 = scalar_lea.hbm %s4029_s4, 32 }
 0x2a7   : > { %p2809_p13 = scmp.ne.s32.totalorder %s4029_s4, %s2808_s18  ;;  %p2814_p3 = scmp.lt.u32.totalorder %s2808_s18, %s4029_s4 }
 0x2a9   : > { %p2810_p0 = pnand %p2809_p13, %p2949_p2 }
 0x2ab   : > { %p2811_p1 = pneg %p2810_p0 }
 0x2ad   : > { %p2816_p5 = pnand %p2814_p3, %p2811_p1 }
 0x2af   : > { %2819 = shalt.err (!%p2816_p5)
}
 0x2b0   : > { %2676 = dma.vmem_to_hbm [thread:$0]  (%p2949_p2), %s2231_s14, 32, %s4029_s4, [#allocation6]  }
 0x2b1   : > { %2845 = dma.done.wait (%p2949_p2), [#allocation6], 32  }
 0x2b2   : > { %2847 = vsyncadd (%p2949_p2), [#allocation6], 4294967264 }
 0x2b3 PF: > { %p2686_p4 = scmp.ge.s32.totalorder %s2874_s20, 2  ;;  %s2246_s24 = sand.u32 1, %s2854_s15  }
 0x2b4   : > { %s2247_s10 = scalar_lea.sflag [#allocation4], %s2246_s24 }
 0x2b5   : > { %p2681_p6 = pnand %p2686_p4, %p2966_p8 }
 0x2b7   : > { %2849 = dma.done.wait (!%p2681_p6), %s2247_s10, 2048  }
 0x2b8   : > { %2851 = vsyncadd (!%p2681_p6), %s2247_s10, 4294965248  ;;  %s19_s20 = sadd.s32 1, %s2874_s20   ;;  %s4037_s15 = smov %s2858_s16 }
 0x2b9   : > { %p16_p7 = scmp.ge.s32.totalorder %s19_s20, 4   ;;  %s4038_s16 = smov %s2862_s17 }
 0x2ba   : > { %s4039_s17 = smov %s2972_s29  ;;  %s4040_s18 = smov %s2870_s19 }
 0x2bb   : > { %s4041_s19 = smov %s4043_s23  ;;  %18 = sbr.rel (!%p16_p7) target bundleno = 5 (0x5), region = 86 }
 0x2c2   :  { %2252 = vsyncpa [#allocation4], 1 }
 0x2c3   :  { %2254 = vsyncpa [#allocation4 + $0x1], 1 }
 0x2c4   :  { %2255 = vsyncpa [#allocation6], 1 }

</bundles_post_ra>
